<compile_context>
chip_gen: v7x
topology: tpu7x:2x2x1
jax: 0.10.0
libtpu: 0.0.40
codegen_flags: <defaults>
</compile_context>

<pallas_src>
import jax
import jax.numpy as jnp
from jax import lax
from jax.experimental import pallas as pl
from jax.experimental.pallas import tpu as pltpu

# ----------------------------- model dims (small) -----------------------------
VOCAB = 50
B = 2          # batch
S = 8          # sequence length
H_BERT = 32    # stand-in for bert.config.hidden_size (=768 in BioBERT)
FFN = 64       # encoder FFN width
HID = 32       # stand-in for hidden_dim (=256); 4*HID = 128 -> lane-dense gates
OUT = 256      # output Linear width (matches nn.Linear(hidden_dim*2, 256))

N_TOK = B * S
G = 4 * HID
SLAB_W = 3 * 128     # width of the packed-constant slab (= padded QKV bias width)
NUM_INPUTS = 10


# =============================== fused kernel =================================
def _layernorm(x, g, b, eps=1e-12):
    mu = jnp.mean(x, axis=-1, keepdims=True)
    var = jnp.mean((x - mu) ** 2, axis=-1, keepdims=True)
    return (x - mu) * lax.rsqrt(var + eps) * g + b


def bert_bilstm_kernel(x_ref, attn_bias_ref,
                       wqkv_ref, wo_ref, w1_ref, w2_ref,
                       wih_ref, whh_ref, wlin_ref, consts_ref,
                       out_ref):
    f32 = jnp.float32
    bf16 = jnp.bfloat16
    N = N_TOK

    # ------------------ packed small f32 constants (one DMA) ------------------
    bqkv   = consts_ref[0:1, :]                       # [1, 384] (Q|K|V blocks of 128)
    bo     = consts_ref[1:2, 0:H_BERT]
    g1     = consts_ref[2:3, 0:H_BERT]
    be1    = consts_ref[3:4, 0:H_BERT]
    b1     = consts_ref[4:5, 0:FFN]
    b2     = consts_ref[5:6, 0:H_BERT]
    g2     = consts_ref[6:7, 0:H_BERT]
    be2    = consts_ref[7:8, 0:H_BERT]
    bias_f = consts_ref[8:9, 0:G]
    bias_b = consts_ref[9:10, 0:G]
    blin   = consts_ref[10:11, 0:OUT]

    # --------------------- BERT encoder (stand-in), flat 2-D ------------------
    # NOTE: rows are in time-major (s, b) order so the LSTM stage below never needs
    # an in-kernel transpose; every encoder op here is row-wise so order is free.
    x = x_ref[...]                                     # [N, H] f32
    x16 = x.astype(bf16)

    # fused Q|K|V projection; each output lives in its own 128-lane block and the
    # 1/sqrt(H) attention scale is pre-folded into the Q columns / bias.
    qkv = jnp.dot(x16, wqkv_ref[...], preferred_element_type=f32) + bqkv    # [N, 384]
    q = qkv[:, 0:128]            # real data in lanes 0:H, zeros elsewhere
    k = qkv[:, 128:256]
    v = qkv[:, 256:384]

    # single masked attention matmul over all N = B*S rows; padding + cross-example
    # structure is carried by the precomputed additive bias, zero pad-lanes add 0.
    s = jnp.einsum('nd,md->nm', q.astype(bf16), k.astype(bf16),
                   preferred_element_type=f32) + attn_bias_ref[...]         # [N, N]
    m = jnp.max(s, axis=-1, keepdims=True)
    e = jnp.exp(s - m)
    p = e * pl.reciprocal(jnp.sum(e, axis=-1, keepdims=True), approx=True)
    ctx = jnp.dot(p.astype(bf16), v.astype(bf16),
                  preferred_element_type=f32)                                # [N, 128]

    attn_out = jnp.dot(ctx.astype(bf16), wo_ref[...],
                       preferred_element_type=f32) + bo                      # [N, H]
    x1 = _layernorm(x + attn_out, g1, be1)

    # TODO(synk): PyTorch/BERT GELU is the exact erf form; tanh approximation kept here.
    h1 = jax.nn.gelu(jnp.dot(x1.astype(bf16), w1_ref[...],
                             preferred_element_type=f32) + b1)
    ff = jnp.dot(h1.astype(bf16), w2_ref[...],
                 preferred_element_type=f32) + b2
    seq = _layernorm(x1 + ff, g2, be2)                 # [N, H] f32, (s, b) order

    # -------------------------------- BiLSTM ----------------------------------
    # fused fwd|bwd input-to-gate projection for the whole sequence (one MXU dot);
    # combined (b_ih + b_hh) biases folded in outside the recurrence.
    xg = jnp.dot(seq.astype(bf16), wih_ref[...], preferred_element_type=f32)   # [N, 2G]
    xg_f = xg[:, 0:G] + bias_f                         # [N, G], row = s*B + b
    xg_b = xg[:, G:2 * G] + bias_b

    # one pre-loop restructure: step t needs fwd time t and bwd time S-1-t; all
    # slices are contiguous sublane blocks and sit OFF the serial recurrence path.
    pieces = []
    for t in range(S):
        pieces.append(xg_f[t * B:(t + 1) * B, :])              # fwd, time t
        pieces.append(xg_b[(S - 1 - t) * B:(S - t) * B, :])    # bwd, time S-1-t
    xg_steps = jnp.concatenate(pieces, axis=0)         # [2*S*B, G]; step t -> rows 2Bt:2B(t+1)

    # row-select mask (hoisted, computed once): fwd states in rows 0:B, bwd in B:2B
    row_ids = lax.broadcasted_iota(jnp.int32, (2 * B, G), 0)
    is_fwd = row_ids < B

    h = jnp.zeros((2 * B, HID), f32)
    c = jnp.zeros((2 * B, HID), f32)
    h_f_steps = []
    h_b_steps = []
    # merged fwd+bwd recurrence, fully static (Python-unrolled) S steps,
    # one [2B, HID] @ [HID, 8*HID] matmul + one 128-lane select per step.
    for t in range(S):
        hg = jnp.dot(h.astype(bf16), whh_ref[...], preferred_element_type=f32)   # [2B, 2G]
        gates = xg_steps[2 * B * t:2 * B * (t + 1), :] \
            + jnp.where(is_fwd, hg[:, 0:G], hg[:, G:2 * G])
        i_g = jax.nn.sigmoid(gates[:, 0 * HID:1 * HID])     # PyTorch gate order i,f,g,o
        f_g = jax.nn.sigmoid(gates[:, 1 * HID:2 * HID])
        g_g = jnp.tanh(gates[:, 2 * HID:3 * HID])
        o_g = jax.nn.sigmoid(gates[:, 3 * HID:4 * HID])
        c = f_g * c + i_g * g_g
        h = o_g * jnp.tanh(c)                               # [2B, HID] f32
        h_f_steps.append(h[0:B, :])                         # fwd hidden at time t
        h_b_steps.append(h[B:2 * B, :])                     # bwd hidden at time S-1-t

    # single post-loop stitch back to (b, s) order; no masked partial stores.
    hs_f = jnp.stack(h_f_steps, axis=1).reshape(N, HID)            # [N, HID], (b, s) order
    hs_b = jnp.stack(h_b_steps[::-1], axis=1).reshape(N, HID)

    # -------------------------------- Linear -----------------------------------
    out = (jnp.dot(hs_f.astype(bf16), wlin_ref[0:HID, :], preferred_element_type=f32)
           + jnp.dot(hs_b.astype(bf16), wlin_ref[HID:2 * HID, :], preferred_element_type=f32)
           + blin)                                                   # [N, OUT]
    out_ref[...] = out.reshape(B, S, OUT).astype(out_ref.dtype)


def fused_forward_call(x_flat, attn_bias, kp):
    vmem = pl.BlockSpec(memory_space=pltpu.MemorySpace.VMEM)
    # TODO(synk): at real BioBERT dims (H=768, long S, real batch) add a grid over
    # B*S row tiles with dimension_semantics=("parallel", ...) and an explicit
    # pltpu.CompilerParams(vmem_limit_bytes=...); the grid-less all-resident design
    # is only appropriate at these toy dims (v7x has 64 MiB physical VMEM).
    return pl.pallas_call(
        bert_bilstm_kernel,
        out_shape=jax.ShapeDtypeStruct((B, S, OUT), jnp.float32),
        in_specs=[vmem] * NUM_INPUTS,
        out_specs=vmem,
    )(x_flat, attn_bias,
      kp['wqkv_pad'], kp['wo_pad'], kp['w1'], kp['w2'],
      kp['wih_cat'], kp['whh_cat'], kp['wlin_cat'], kp['consts'])


# ================================ parameters ==================================
def init_params(key):
    """Raw PyTorch-layout synthetic parameters."""
    ks = iter(jax.random.split(key, 32))
    n = lambda shape, s=0.1: (s * jax.random.normal(next(ks), shape)).astype(jnp.float32)
    return {
        # embeddings (glue)
        'word_emb': n((VOCAB, H_BERT)),
        'pos_emb': n((S, H_BERT)),
        # encoder stand-in
        'wq': n((H_BERT, H_BERT)), 'bq': n((1, H_BERT)),
        'wk': n((H_BERT, H_BERT)), 'bk': n((1, H_BERT)),
        'wv': n((H_BERT, H_BERT)), 'bv': n((1, H_BERT)),
        'wo': n((H_BERT, H_BERT)), 'bo': n((1, H_BERT)),
        'ln1_g': jnp.ones((1, H_BERT), jnp.float32),
        'ln1_b': jnp.zeros((1, H_BERT), jnp.float32),
        'w1': n((H_BERT, FFN)), 'b1': n((1, FFN)),
        'w2': n((FFN, H_BERT)), 'b2': n((1, H_BERT)),
        'ln2_g': jnp.ones((1, H_BERT), jnp.float32),
        'ln2_b': jnp.zeros((1, H_BERT), jnp.float32),
        # BiLSTM (PyTorch layout [4*HID, in], gate order i,f,g,o; bias = b_ih + b_hh)
        'wih_f': n((4 * HID, H_BERT)), 'whh_f': n((4 * HID, HID)), 'bias_f': n((1, 4 * HID)),
        'wih_b': n((4 * HID, H_BERT)), 'whh_b': n((4 * HID, HID)), 'bias_b': n((1, 4 * HID)),
        # final Linear (PyTorch layout [out, in])
        'wlin': n((OUT, 2 * HID)), 'blin': n((1, OUT)),
    }


def prepare_params(p):
    """One-time re-layout of PyTorch-style weights into kernel-ready form
    (128-lane padded QKV blocks, concatenation, transposition, scale folding,
    bf16 MXU operands, packed f32 constant slab)."""
    bf16 = jnp.bfloat16
    scale = 1.0 / (H_BERT ** 0.5)            # attention scale folded into Wq / bq

    def pad_lanes(a, width):
        return jnp.pad(a, ((0, 0), (0, width - a.shape[1])))

    # Q|K|V each in their own 128-lane block -> vreg-aligned extraction in-kernel.
    wqkv_pad = jnp.concatenate([pad_lanes(p['wq'] * scale, 128),
                                pad_lanes(p['wk'], 128),
                                pad_lanes(p['wv'], 128)], axis=1).astype(bf16)   # [H, 384]
    bqkv_pad = jnp.concatenate([pad_lanes(p['bq'] * scale, 128),
                                pad_lanes(p['bk'], 128),
                                pad_lanes(p['bv'], 128)], axis=1)                # [1, 384]
    # row-padded Wo so the 128-lane attention context feeds the dot directly.
    wo_pad = jnp.pad(p['wo'], ((0, 128 - H_BERT), (0, 0))).astype(bf16)          # [128, H]

    # packed f32 constant slab: one constant per row, each starting at lane 0.
    rows = [bqkv_pad,
            p['bo'], p['ln1_g'], p['ln1_b'], p['b1'], p['b2'],
            p['ln2_g'], p['ln2_b'], p['bias_f'], p['bias_b'], p['blin']]
    consts = jnp.concatenate(
        [pad_lanes(r.astype(jnp.float32), SLAB_W) for r in rows], axis=0)        # [11, 384]

    return {
        'word_emb': p['word_emb'], 'pos_emb': p['pos_emb'],
        'wqkv_pad': wqkv_pad, 'wo_pad': wo_pad,
        'w1': p['w1'].astype(bf16), 'w2': p['w2'].astype(bf16),
        # [H, 8*HID]: cols 0:4H = W_ih_fwd^T, 4H:8H = W_ih_bwd^T
        'wih_cat': jnp.concatenate([p['wih_f'].T, p['wih_b'].T], axis=1).astype(bf16),
        # [HID, 8*HID]: cols 0:4H = W_hh_fwd^T, 4H:8H = W_hh_bwd^T
        'whh_cat': jnp.concatenate([p['whh_f'].T, p['whh_b'].T], axis=1).astype(bf16),
        'wlin_cat': p['wlin'].T.astype(bf16),   # [2*HID, OUT]
        'consts': consts,
    }


# ================================ forward =====================================
@jax.jit
def bert_bilstm_forward(input_ids, attention_mask, kp):
    # embedding lookup (glue), then flatten in time-major (s, b) order so the
    # kernel's LSTM stage needs no in-kernel transpose.
    x_emb = kp['word_emb'][input_ids] + kp['pos_emb'][None, :, :]      # [B, S, H_BERT]
    x_flat = jnp.transpose(x_emb, (1, 0, 2)).reshape(N_TOK, H_BERT)    # rows = s*B + b

    # precomputed additive attention bias: 0 where (same example AND key not padded),
    # -1e9 elsewhere (key padding + cross-example blocks), indexed in (s, b) order.
    batch_id = jnp.tile(jnp.arange(B), (S,))                           # [N]
    key_ok = attention_mask.T.reshape(N_TOK) > 0                       # [N]
    attn_bias = jnp.where((batch_id[:, None] == batch_id[None, :]) & key_ok[None, :],
                          0.0, -1e9).astype(jnp.float32)               # [N, N]

    # note: the module defines Dropout(0.2) but never applies it in forward().
    return fused_forward_call(x_flat, attn_bias, kp)                   # [B, S, OUT]


if __name__ == "__main__":
    key = jax.random.PRNGKey(0)
    k_ids, k_param = jax.random.split(key)

    input_ids = jax.random.randint(k_ids, (B, S), 0, VOCAB, dtype=jnp.int32)
    # attention mask: first example full length, second padded after 5 tokens
    attention_mask = jnp.array([[1] * S, [1] * 5 + [0] * (S - 5)], dtype=jnp.int32)

    params = prepare_params(init_params(k_param))

    out = bert_bilstm_forward(input_ids, attention_mask, params)
    out = jax.block_until_ready(out)

    assert out.shape == (B, S, OUT), out.shape
    assert bool(jnp.all(jnp.isfinite(out)))
    print("KERNEL_OK")
</pallas_src>

<mosaic_0001>
module attributes {stable_mosaic.version = 11 : i64} {
  func.func @bert_bilstm_kernel(%arg0: memref<16x32xf32, #tpu.memory_space<vmem>>, %arg1: memref<16x16xf32, #tpu.memory_space<vmem>>, %arg2: memref<32x384xbf16, #tpu.memory_space<vmem>>, %arg3: memref<128x32xbf16, #tpu.memory_space<vmem>>, %arg4: memref<32x64xbf16, #tpu.memory_space<vmem>>, %arg5: memref<64x32xbf16, #tpu.memory_space<vmem>>, %arg6: memref<32x256xbf16, #tpu.memory_space<vmem>>, %arg7: memref<32x256xbf16, #tpu.memory_space<vmem>>, %arg8: memref<64x256xbf16, #tpu.memory_space<vmem>>, %arg9: memref<11x384xf32, #tpu.memory_space<vmem>>, %arg10: memref<2x8x256xf32, #tpu.memory_space<vmem>>) attributes {dimension_semantics = [], scalar_prefetch = 0 : i64, scratch_operands = 0 : i64, tpu.core_type = #tpu.core_type<tc>} {
    %c0 = arith.constant 0 : index
    %c0_0 = arith.constant 0 : index
    %0 = vector.load %arg9[%c0, %c0_0] : memref<11x384xf32, #tpu.memory_space<vmem>>, vector<1x384xf32>
    %c1 = arith.constant 1 : index
    %c0_1 = arith.constant 0 : index
    %1 = vector.load %arg9[%c1, %c0_1] : memref<11x384xf32, #tpu.memory_space<vmem>>, vector<1x32xf32>
    %c2 = arith.constant 2 : index
    %c0_2 = arith.constant 0 : index
    %2 = vector.load %arg9[%c2, %c0_2] : memref<11x384xf32, #tpu.memory_space<vmem>>, vector<1x32xf32>
    %c3 = arith.constant 3 : index
    %c0_3 = arith.constant 0 : index
    %3 = vector.load %arg9[%c3, %c0_3] : memref<11x384xf32, #tpu.memory_space<vmem>>, vector<1x32xf32>
    %c4 = arith.constant 4 : index
    %c0_4 = arith.constant 0 : index
    %4 = vector.load %arg9[%c4, %c0_4] : memref<11x384xf32, #tpu.memory_space<vmem>>, vector<1x64xf32>
    %c5 = arith.constant 5 : index
    %c0_5 = arith.constant 0 : index
    %5 = vector.load %arg9[%c5, %c0_5] : memref<11x384xf32, #tpu.memory_space<vmem>>, vector<1x32xf32>
    %c6 = arith.constant 6 : index
    %c0_6 = arith.constant 0 : index
    %6 = vector.load %arg9[%c6, %c0_6] : memref<11x384xf32, #tpu.memory_space<vmem>>, vector<1x32xf32>
    %c7 = arith.constant 7 : index
    %c0_7 = arith.constant 0 : index
    %7 = vector.load %arg9[%c7, %c0_7] : memref<11x384xf32, #tpu.memory_space<vmem>>, vector<1x32xf32>
    %c8 = arith.constant 8 : index
    %c0_8 = arith.constant 0 : index
    %8 = vector.load %arg9[%c8, %c0_8] : memref<11x384xf32, #tpu.memory_space<vmem>>, vector<1x128xf32>
    %c9 = arith.constant 9 : index
    %c0_9 = arith.constant 0 : index
    %9 = vector.load %arg9[%c9, %c0_9] : memref<11x384xf32, #tpu.memory_space<vmem>>, vector<1x128xf32>
    %c10 = arith.constant 10 : index
    %c0_10 = arith.constant 0 : index
    %10 = vector.load %arg9[%c10, %c0_10] : memref<11x384xf32, #tpu.memory_space<vmem>>, vector<1x256xf32>
    %c0_11 = arith.constant 0 : index
    %c0_12 = arith.constant 0 : index
    %11 = vector.load %arg0[%c0_11, %c0_12] : memref<16x32xf32, #tpu.memory_space<vmem>>, vector<16x32xf32>
    %12 = arith.truncf %11 : vector<16x32xf32> to vector<16x32xbf16>
    %c0_13 = arith.constant 0 : index
    %c0_14 = arith.constant 0 : index
    %13 = vector.load %arg2[%c0_13, %c0_14] : memref<32x384xbf16, #tpu.memory_space<vmem>>, vector<32x384xbf16>
    %cst = arith.constant dense<0.000000e+00> : vector<16x384xf32>
    %14 = tpu.matmul %12, %13, %cst {dimension_numbers = #tpu.dot_dimension_numbers<[1], [0], [0], [1], [0, 0, 1, 1], [], []>} : vector<16x32xbf16>, vector<32x384xbf16>, vector<16x384xf32> -> vector<16x384xf32>
    %15 = vector.broadcast %0 : vector<1x384xf32> to vector<16x384xf32>
    %16 = arith.addf %14, %15 : vector<16x384xf32>
    %17 = vector.extract_strided_slice %16 {offsets = [0, 0], sizes = [16, 128], strides = [1, 1]} : vector<16x384xf32> to vector<16x128xf32>
    %18 = vector.extract_strided_slice %16 {offsets = [0, 128], sizes = [16, 128], strides = [1, 1]} : vector<16x384xf32> to vector<16x128xf32>
    %19 = vector.extract_strided_slice %16 {offsets = [0, 256], sizes = [16, 128], strides = [1, 1]} : vector<16x384xf32> to vector<16x128xf32>
    %20 = arith.truncf %17 : vector<16x128xf32> to vector<16x128xbf16>
    %21 = arith.truncf %18 : vector<16x128xf32> to vector<16x128xbf16>
    "tpu.trace_start"() <{level = 10 : i32, message = "nd,md->nm"}> : () -> ()
    %cst_15 = arith.constant dense<0.000000e+00> : vector<16x16xf32>
    %22 = tpu.matmul %20, %21, %cst_15 {dimension_numbers = #tpu.dot_dimension_numbers<[1], [1], [0], [0], [0, 0, 1, 0], [], []>} : vector<16x128xbf16>, vector<16x128xbf16>, vector<16x16xf32> -> vector<16x16xf32>
    "tpu.trace_stop"() : () -> ()
    %c0_16 = arith.constant 0 : index
    %c0_17 = arith.constant 0 : index
    %23 = vector.load %arg1[%c0_16, %c0_17] : memref<16x16xf32, #tpu.memory_space<vmem>>, vector<16x16xf32>
    %24 = arith.addf %22, %23 : vector<16x16xf32>
    %cst_18 = arith.constant dense<0xFF800000> : vector<16xf32>
    %25 = vector.multi_reduction <maximumf>, %24, %cst_18 [1] : vector<16x16xf32> to vector<16xf32>
    %26 = vector.shape_cast %25 : vector<16xf32> to vector<16x1xf32>
    %27 = vector.broadcast %26 : vector<16x1xf32> to vector<16x16xf32>
    %28 = arith.subf %24, %27 : vector<16x16xf32>
    %29 = math.exp %28 : vector<16x16xf32>
    %cst_19 = arith.constant dense<0.000000e+00> : vector<16xf32>
    %30 = vector.multi_reduction <add>, %29, %cst_19 [1] : vector<16x16xf32> to vector<16xf32>
    %31 = vector.shape_cast %30 : vector<16xf32> to vector<16x1xf32>
    %32 = tpu.reciprocal %31 {approx = true} : vector<16x1xf32> -> vector<16x1xf32>
    %33 = vector.broadcast %32 : vector<16x1xf32> to vector<16x16xf32>
    %34 = arith.mulf %29, %33 : vector<16x16xf32>
    %35 = arith.truncf %34 : vector<16x16xf32> to vector<16x16xbf16>
    %36 = arith.truncf %19 : vector<16x128xf32> to vector<16x128xbf16>
    %cst_20 = arith.constant dense<0.000000e+00> : vector<16x128xf32>
    %37 = tpu.matmul %35, %36, %cst_20 {dimension_numbers = #tpu.dot_dimension_numbers<[1], [0], [0], [1], [0, 0, 1, 1], [], []>} : vector<16x16xbf16>, vector<16x128xbf16>, vector<16x128xf32> -> vector<16x128xf32>
    %38 = arith.truncf %37 : vector<16x128xf32> to vector<16x128xbf16>
    %c0_21 = arith.constant 0 : index
    %c0_22 = arith.constant 0 : index
    %39 = vector.load %arg3[%c0_21, %c0_22] : memref<128x32xbf16, #tpu.memory_space<vmem>>, vector<128x32xbf16>
    %cst_23 = arith.constant dense<0.000000e+00> : vector<16x32xf32>
    %40 = tpu.matmul %38, %39, %cst_23 {dimension_numbers = #tpu.dot_dimension_numbers<[1], [0], [0], [1], [0, 0, 1, 1], [], []>} : vector<16x128xbf16>, vector<128x32xbf16>, vector<16x32xf32> -> vector<16x32xf32>
    %41 = vector.broadcast %1 : vector<1x32xf32> to vector<16x32xf32>
    %42 = arith.addf %40, %41 : vector<16x32xf32>
    %43 = arith.addf %11, %42 : vector<16x32xf32>
    %cst_24 = arith.constant dense<0.000000e+00> : vector<16xf32>
    %44 = vector.multi_reduction <add>, %43, %cst_24 [1] : vector<16x32xf32> to vector<16xf32>
    %45 = vector.shape_cast %44 : vector<16xf32> to vector<16x1xf32>
    %cst_25 = arith.constant 3.200000e+01 : f32
    %46 = vector.broadcast %cst_25 : f32 to vector<16x1xf32>
    %47 = arith.divf %45, %46 : vector<16x1xf32>
    %48 = vector.broadcast %47 : vector<16x1xf32> to vector<16x32xf32>
    %49 = arith.subf %43, %48 : vector<16x32xf32>
    %50 = arith.mulf %49, %49 : vector<16x32xf32>
    %cst_26 = arith.constant dense<0.000000e+00> : vector<16xf32>
    %51 = vector.multi_reduction <add>, %50, %cst_26 [1] : vector<16x32xf32> to vector<16xf32>
    %52 = vector.shape_cast %51 : vector<16xf32> to vector<16x1xf32>
    %cst_27 = arith.constant 3.200000e+01 : f32
    %53 = vector.broadcast %cst_27 : f32 to vector<16x1xf32>
    %54 = arith.divf %52, %53 : vector<16x1xf32>
    %55 = vector.broadcast %47 : vector<16x1xf32> to vector<16x32xf32>
    %56 = arith.subf %43, %55 : vector<16x32xf32>
    %cst_28 = arith.constant 9.99999996E-13 : f32
    %57 = vector.broadcast %cst_28 : f32 to vector<16x1xf32>
    %58 = arith.addf %54, %57 : vector<16x1xf32>
    %59 = math.rsqrt %58 : vector<16x1xf32>
    %60 = vector.broadcast %59 : vector<16x1xf32> to vector<16x32xf32>
    %61 = arith.mulf %56, %60 : vector<16x32xf32>
    %62 = vector.broadcast %2 : vector<1x32xf32> to vector<16x32xf32>
    %63 = arith.mulf %61, %62 : vector<16x32xf32>
    %64 = vector.broadcast %3 : vector<1x32xf32> to vector<16x32xf32>
    %65 = arith.addf %63, %64 : vector<16x32xf32>
    %66 = arith.truncf %65 : vector<16x32xf32> to vector<16x32xbf16>
    %c0_29 = arith.constant 0 : index
    %c0_30 = arith.constant 0 : index
    %67 = vector.load %arg4[%c0_29, %c0_30] : memref<32x64xbf16, #tpu.memory_space<vmem>>, vector<32x64xbf16>
    %cst_31 = arith.constant dense<0.000000e+00> : vector<16x64xf32>
    %68 = tpu.matmul %66, %67, %cst_31 {dimension_numbers = #tpu.dot_dimension_numbers<[1], [0], [0], [1], [0, 0, 1, 1], [], []>} : vector<16x32xbf16>, vector<32x64xbf16>, vector<16x64xf32> -> vector<16x64xf32>
    %69 = vector.broadcast %4 : vector<1x64xf32> to vector<16x64xf32>
    %70 = arith.addf %68, %69 : vector<16x64xf32>
    %71 = arith.mulf %70, %70 : vector<16x64xf32>
    %72 = arith.mulf %70, %71 : vector<16x64xf32>
    %cst_32 = arith.constant 4.471500e-02 : f32
    %73 = vector.broadcast %cst_32 : f32 to vector<16x64xf32>
    %74 = arith.mulf %73, %72 : vector<16x64xf32>
    %75 = arith.addf %70, %74 : vector<16x64xf32>
    %cst_33 = arith.constant 0.797884583 : f32
    %76 = vector.broadcast %cst_33 : f32 to vector<16x64xf32>
    %77 = arith.mulf %76, %75 : vector<16x64xf32>
    %78 = math.tanh %77 : vector<16x64xf32>
    %cst_34 = arith.constant 1.000000e+00 : f32
    %79 = vector.broadcast %cst_34 : f32 to vector<16x64xf32>
    %80 = arith.addf %79, %78 : vector<16x64xf32>
    %cst_35 = arith.constant 5.000000e-01 : f32
    %81 = vector.broadcast %cst_35 : f32 to vector<16x64xf32>
    %82 = arith.mulf %81, %80 : vector<16x64xf32>
    %83 = arith.mulf %70, %82 : vector<16x64xf32>
    %84 = arith.truncf %83 : vector<16x64xf32> to vector<16x64xbf16>
    %c0_36 = arith.constant 0 : index
    %c0_37 = arith.constant 0 : index
    %85 = vector.load %arg5[%c0_36, %c0_37] : memref<64x32xbf16, #tpu.memory_space<vmem>>, vector<64x32xbf16>
    %cst_38 = arith.constant dense<0.000000e+00> : vector<16x32xf32>
    %86 = tpu.matmul %84, %85, %cst_38 {dimension_numbers = #tpu.dot_dimension_numbers<[1], [0], [0], [1], [0, 0, 1, 1], [], []>} : vector<16x64xbf16>, vector<64x32xbf16>, vector<16x32xf32> -> vector<16x32xf32>
    %87 = vector.broadcast %5 : vector<1x32xf32> to vector<16x32xf32>
    %88 = arith.addf %86, %87 : vector<16x32xf32>
    %89 = arith.addf %65, %88 : vector<16x32xf32>
    %cst_39 = arith.constant dense<0.000000e+00> : vector<16xf32>
    %90 = vector.multi_reduction <add>, %89, %cst_39 [1] : vector<16x32xf32> to vector<16xf32>
    %91 = vector.shape_cast %90 : vector<16xf32> to vector<16x1xf32>
    %cst_40 = arith.constant 3.200000e+01 : f32
    %92 = vector.broadcast %cst_40 : f32 to vector<16x1xf32>
    %93 = arith.divf %91, %92 : vector<16x1xf32>
    %94 = vector.broadcast %93 : vector<16x1xf32> to vector<16x32xf32>
    %95 = arith.subf %89, %94 : vector<16x32xf32>
    %96 = arith.mulf %95, %95 : vector<16x32xf32>
    %cst_41 = arith.constant dense<0.000000e+00> : vector<16xf32>
    %97 = vector.multi_reduction <add>, %96, %cst_41 [1] : vector<16x32xf32> to vector<16xf32>
    %98 = vector.shape_cast %97 : vector<16xf32> to vector<16x1xf32>
    %cst_42 = arith.constant 3.200000e+01 : f32
    %99 = vector.broadcast %cst_42 : f32 to vector<16x1xf32>
    %100 = arith.divf %98, %99 : vector<16x1xf32>
    %101 = vector.broadcast %93 : vector<16x1xf32> to vector<16x32xf32>
    %102 = arith.subf %89, %101 : vector<16x32xf32>
    %cst_43 = arith.constant 9.99999996E-13 : f32
    %103 = vector.broadcast %cst_43 : f32 to vector<16x1xf32>
    %104 = arith.addf %100, %103 : vector<16x1xf32>
    %105 = math.rsqrt %104 : vector<16x1xf32>
    %106 = vector.broadcast %105 : vector<16x1xf32> to vector<16x32xf32>
    %107 = arith.mulf %102, %106 : vector<16x32xf32>
    %108 = vector.broadcast %6 : vector<1x32xf32> to vector<16x32xf32>
    %109 = arith.mulf %107, %108 : vector<16x32xf32>
    %110 = vector.broadcast %7 : vector<1x32xf32> to vector<16x32xf32>
    %111 = arith.addf %109, %110 : vector<16x32xf32>
    %112 = arith.truncf %111 : vector<16x32xf32> to vector<16x32xbf16>
    %c0_44 = arith.constant 0 : index
    %c0_45 = arith.constant 0 : index
    %113 = vector.load %arg6[%c0_44, %c0_45] : memref<32x256xbf16, #tpu.memory_space<vmem>>, vector<32x256xbf16>
    %cst_46 = arith.constant dense<0.000000e+00> : vector<16x256xf32>
    %114 = tpu.matmul %112, %113, %cst_46 {dimension_numbers = #tpu.dot_dimension_numbers<[1], [0], [0], [1], [0, 0, 1, 1], [], []>} : vector<16x32xbf16>, vector<32x256xbf16>, vector<16x256xf32> -> vector<16x256xf32>
    %115 = vector.extract_strided_slice %114 {offsets = [0, 0], sizes = [16, 128], strides = [1, 1]} : vector<16x256xf32> to vector<16x128xf32>
    %116 = vector.broadcast %8 : vector<1x128xf32> to vector<16x128xf32>
    %117 = arith.addf %115, %116 : vector<16x128xf32>
    %118 = vector.extract_strided_slice %114 {offsets = [0, 128], sizes = [16, 128], strides = [1, 1]} : vector<16x256xf32> to vector<16x128xf32>
    %119 = vector.broadcast %9 : vector<1x128xf32> to vector<16x128xf32>
    %120 = arith.addf %118, %119 : vector<16x128xf32>
    %121 = vector.extract_strided_slice %117 {offsets = [0, 0], sizes = [2, 128], strides = [1, 1]} : vector<16x128xf32> to vector<2x128xf32>
    %122 = vector.extract_strided_slice %120 {offsets = [14, 0], sizes = [2, 128], strides = [1, 1]} : vector<16x128xf32> to vector<2x128xf32>
    %123 = vector.extract_strided_slice %117 {offsets = [2, 0], sizes = [2, 128], strides = [1, 1]} : vector<16x128xf32> to vector<2x128xf32>
    %124 = vector.extract_strided_slice %120 {offsets = [12, 0], sizes = [2, 128], strides = [1, 1]} : vector<16x128xf32> to vector<2x128xf32>
    %125 = vector.extract_strided_slice %117 {offsets = [4, 0], sizes = [2, 128], strides = [1, 1]} : vector<16x128xf32> to vector<2x128xf32>
    %126 = vector.extract_strided_slice %120 {offsets = [10, 0], sizes = [2, 128], strides = [1, 1]} : vector<16x128xf32> to vector<2x128xf32>
    %127 = vector.extract_strided_slice %117 {offsets = [6, 0], sizes = [2, 128], strides = [1, 1]} : vector<16x128xf32> to vector<2x128xf32>
    %128 = vector.extract_strided_slice %120 {offsets = [8, 0], sizes = [2, 128], strides = [1, 1]} : vector<16x128xf32> to vector<2x128xf32>
    %129 = vector.extract_strided_slice %117 {offsets = [8, 0], sizes = [2, 128], strides = [1, 1]} : vector<16x128xf32> to vector<2x128xf32>
    %130 = vector.extract_strided_slice %120 {offsets = [6, 0], sizes = [2, 128], strides = [1, 1]} : vector<16x128xf32> to vector<2x128xf32>
    %131 = vector.extract_strided_slice %117 {offsets = [10, 0], sizes = [2, 128], strides = [1, 1]} : vector<16x128xf32> to vector<2x128xf32>
    %132 = vector.extract_strided_slice %120 {offsets = [4, 0], sizes = [2, 128], strides = [1, 1]} : vector<16x128xf32> to vector<2x128xf32>
    %133 = vector.extract_strided_slice %117 {offsets = [12, 0], sizes = [2, 128], strides = [1, 1]} : vector<16x128xf32> to vector<2x128xf32>
    %134 = vector.extract_strided_slice %120 {offsets = [2, 0], sizes = [2, 128], strides = [1, 1]} : vector<16x128xf32> to vector<2x128xf32>
    %135 = vector.extract_strided_slice %117 {offsets = [14, 0], sizes = [2, 128], strides = [1, 1]} : vector<16x128xf32> to vector<2x128xf32>
    %136 = vector.extract_strided_slice %120 {offsets = [0, 0], sizes = [2, 128], strides = [1, 1]} : vector<16x128xf32> to vector<2x128xf32>
    %137 = tpu.concatenate %121, %122, %123, %124, %125, %126, %127, %128, %129, %130, %131, %132, %133, %134, %135, %136 in 0 : vector<2x128xf32>, vector<2x128xf32>, vector<2x128xf32>, vector<2x128xf32>, vector<2x128xf32>, vector<2x128xf32>, vector<2x128xf32>, vector<2x128xf32>, vector<2x128xf32>, vector<2x128xf32>, vector<2x128xf32>, vector<2x128xf32>, vector<2x128xf32>, vector<2x128xf32>, vector<2x128xf32>, vector<2x128xf32> -> vector<32x128xf32>
    %138 = tpu.iota {dimensions = array<i32: 0>} : vector<4x128xi32>
    %c2_i32 = arith.constant 2 : i32
    %139 = vector.broadcast %c2_i32 : i32 to vector<4x128xi32>
    %140 = arith.cmpi slt, %138, %139 : vector<4x128xi32>
    %cst_47 = arith.constant 0.000000e+00 : f32
    %141 = vector.broadcast %cst_47 : f32 to vector<4x32xf32>
    %cst_48 = arith.constant 0.000000e+00 : f32
    %142 = vector.broadcast %cst_48 : f32 to vector<4x32xf32>
    %143 = arith.truncf %141 : vector<4x32xf32> to vector<4x32xbf16>
    %c0_49 = arith.constant 0 : index
    %c0_50 = arith.constant 0 : index
    %144 = vector.load %arg7[%c0_49, %c0_50] : memref<32x256xbf16, #tpu.memory_space<vmem>>, vector<32x256xbf16>
    %cst_51 = arith.constant dense<0.000000e+00> : vector<4x256xf32>
    %145 = tpu.matmul %143, %144, %cst_51 {dimension_numbers = #tpu.dot_dimension_numbers<[1], [0], [0], [1], [0, 0, 1, 1], [], []>} : vector<4x32xbf16>, vector<32x256xbf16>, vector<4x256xf32> -> vector<4x256xf32>
    %146 = vector.extract_strided_slice %137 {offsets = [0, 0], sizes = [4, 128], strides = [1, 1]} : vector<32x128xf32> to vector<4x128xf32>
    %147 = vector.extract_strided_slice %145 {offsets = [0, 0], sizes = [4, 128], strides = [1, 1]} : vector<4x256xf32> to vector<4x128xf32>
    %148 = vector.extract_strided_slice %145 {offsets = [0, 128], sizes = [4, 128], strides = [1, 1]} : vector<4x256xf32> to vector<4x128xf32>
    %149 = arith.select %140, %147, %148 : vector<4x128xi1>, vector<4x128xf32>
    %150 = arith.addf %146, %149 : vector<4x128xf32>
    %151 = vector.extract_strided_slice %150 {offsets = [0, 0], sizes = [4, 32], strides = [1, 1]} : vector<4x128xf32> to vector<4x32xf32>
    %152 = arith.negf %151 : vector<4x32xf32>
    %153 = math.exp %152 : vector<4x32xf32>
    %cst_52 = arith.constant 1.000000e+00 : f32
    %154 = vector.broadcast %cst_52 : f32 to vector<4x32xf32>
    %155 = arith.addf %154, %153 : vector<4x32xf32>
    %156 = arith.divf %154, %155 : vector<4x32xf32>
    %157 = vector.extract_strided_slice %150 {offsets = [0, 32], sizes = [4, 32], strides = [1, 1]} : vector<4x128xf32> to vector<4x32xf32>
    %158 = arith.negf %157 : vector<4x32xf32>
    %159 = math.exp %158 : vector<4x32xf32>
    %cst_53 = arith.constant 1.000000e+00 : f32
    %160 = vector.broadcast %cst_53 : f32 to vector<4x32xf32>
    %161 = arith.addf %160, %159 : vector<4x32xf32>
    %162 = arith.divf %160, %161 : vector<4x32xf32>
    %163 = vector.extract_strided_slice %150 {offsets = [0, 64], sizes = [4, 32], strides = [1, 1]} : vector<4x128xf32> to vector<4x32xf32>
    %164 = math.tanh %163 : vector<4x32xf32>
    %165 = vector.extract_strided_slice %150 {offsets = [0, 96], sizes = [4, 32], strides = [1, 1]} : vector<4x128xf32> to vector<4x32xf32>
    %166 = arith.negf %165 : vector<4x32xf32>
    %167 = math.exp %166 : vector<4x32xf32>
    %cst_54 = arith.constant 1.000000e+00 : f32
    %168 = vector.broadcast %cst_54 : f32 to vector<4x32xf32>
    %169 = arith.addf %168, %167 : vector<4x32xf32>
    %170 = arith.divf %168, %169 : vector<4x32xf32>
    %171 = arith.mulf %162, %142 : vector<4x32xf32>
    %172 = arith.mulf %156, %164 : vector<4x32xf32>
    %173 = arith.addf %171, %172 : vector<4x32xf32>
    %174 = math.tanh %173 : vector<4x32xf32>
    %175 = arith.mulf %170, %174 : vector<4x32xf32>
    %176 = vector.extract_strided_slice %175 {offsets = [0, 0], sizes = [2, 32], strides = [1, 1]} : vector<4x32xf32> to vector<2x32xf32>
    %177 = vector.extract_strided_slice %175 {offsets = [2, 0], sizes = [2, 32], strides = [1, 1]} : vector<4x32xf32> to vector<2x32xf32>
    %178 = arith.truncf %175 : vector<4x32xf32> to vector<4x32xbf16>
    %c0_55 = arith.constant 0 : index
    %c0_56 = arith.constant 0 : index
    %179 = vector.load %arg7[%c0_55, %c0_56] : memref<32x256xbf16, #tpu.memory_space<vmem>>, vector<32x256xbf16>
    %cst_57 = arith.constant dense<0.000000e+00> : vector<4x256xf32>
    %180 = tpu.matmul %178, %179, %cst_57 {dimension_numbers = #tpu.dot_dimension_numbers<[1], [0], [0], [1], [0, 0, 1, 1], [], []>} : vector<4x32xbf16>, vector<32x256xbf16>, vector<4x256xf32> -> vector<4x256xf32>
    %181 = vector.extract_strided_slice %137 {offsets = [4, 0], sizes = [4, 128], strides = [1, 1]} : vector<32x128xf32> to vector<4x128xf32>
    %182 = vector.extract_strided_slice %180 {offsets = [0, 0], sizes = [4, 128], strides = [1, 1]} : vector<4x256xf32> to vector<4x128xf32>
    %183 = vector.extract_strided_slice %180 {offsets = [0, 128], sizes = [4, 128], strides = [1, 1]} : vector<4x256xf32> to vector<4x128xf32>
    %184 = arith.select %140, %182, %183 : vector<4x128xi1>, vector<4x128xf32>
    %185 = arith.addf %181, %184 : vector<4x128xf32>
    %186 = vector.extract_strided_slice %185 {offsets = [0, 0], sizes = [4, 32], strides = [1, 1]} : vector<4x128xf32> to vector<4x32xf32>
    %187 = arith.negf %186 : vector<4x32xf32>
    %188 = math.exp %187 : vector<4x32xf32>
    %cst_58 = arith.constant 1.000000e+00 : f32
    %189 = vector.broadcast %cst_58 : f32 to vector<4x32xf32>
    %190 = arith.addf %189, %188 : vector<4x32xf32>
    %191 = arith.divf %189, %190 : vector<4x32xf32>
    %192 = vector.extract_strided_slice %185 {offsets = [0, 32], sizes = [4, 32], strides = [1, 1]} : vector<4x128xf32> to vector<4x32xf32>
    %193 = arith.negf %192 : vector<4x32xf32>
    %194 = math.exp %193 : vector<4x32xf32>
    %cst_59 = arith.constant 1.000000e+00 : f32
    %195 = vector.broadcast %cst_59 : f32 to vector<4x32xf32>
    %196 = arith.addf %195, %194 : vector<4x32xf32>
    %197 = arith.divf %195, %196 : vector<4x32xf32>
    %198 = vector.extract_strided_slice %185 {offsets = [0, 64], sizes = [4, 32], strides = [1, 1]} : vector<4x128xf32> to vector<4x32xf32>
    %199 = math.tanh %198 : vector<4x32xf32>
    %200 = vector.extract_strided_slice %185 {offsets = [0, 96], sizes = [4, 32], strides = [1, 1]} : vector<4x128xf32> to vector<4x32xf32>
    %201 = arith.negf %200 : vector<4x32xf32>
    %202 = math.exp %201 : vector<4x32xf32>
    %cst_60 = arith.constant 1.000000e+00 : f32
    %203 = vector.broadcast %cst_60 : f32 to vector<4x32xf32>
    %204 = arith.addf %203, %202 : vector<4x32xf32>
    %205 = arith.divf %203, %204 : vector<4x32xf32>
    %206 = arith.mulf %197, %173 : vector<4x32xf32>
    %207 = arith.mulf %191, %199 : vector<4x32xf32>
    %208 = arith.addf %206, %207 : vector<4x32xf32>
    %209 = math.tanh %208 : vector<4x32xf32>
    %210 = arith.mulf %205, %209 : vector<4x32xf32>
    %211 = vector.extract_strided_slice %210 {offsets = [0, 0], sizes = [2, 32], strides = [1, 1]} : vector<4x32xf32> to vector<2x32xf32>
    %212 = vector.extract_strided_slice %210 {offsets = [2, 0], sizes = [2, 32], strides = [1, 1]} : vector<4x32xf32> to vector<2x32xf32>
    %213 = arith.truncf %210 : vector<4x32xf32> to vector<4x32xbf16>
    %c0_61 = arith.constant 0 : index
    %c0_62 = arith.constant 0 : index
    %214 = vector.load %arg7[%c0_61, %c0_62] : memref<32x256xbf16, #tpu.memory_space<vmem>>, vector<32x256xbf16>
    %cst_63 = arith.constant dense<0.000000e+00> : vector<4x256xf32>
    %215 = tpu.matmul %213, %214, %cst_63 {dimension_numbers = #tpu.dot_dimension_numbers<[1], [0], [0], [1], [0, 0, 1, 1], [], []>} : vector<4x32xbf16>, vector<32x256xbf16>, vector<4x256xf32> -> vector<4x256xf32>
    %216 = vector.extract_strided_slice %137 {offsets = [8, 0], sizes = [4, 128], strides = [1, 1]} : vector<32x128xf32> to vector<4x128xf32>
    %217 = vector.extract_strided_slice %215 {offsets = [0, 0], sizes = [4, 128], strides = [1, 1]} : vector<4x256xf32> to vector<4x128xf32>
    %218 = vector.extract_strided_slice %215 {offsets = [0, 128], sizes = [4, 128], strides = [1, 1]} : vector<4x256xf32> to vector<4x128xf32>
    %219 = arith.select %140, %217, %218 : vector<4x128xi1>, vector<4x128xf32>
    %220 = arith.addf %216, %219 : vector<4x128xf32>
    %221 = vector.extract_strided_slice %220 {offsets = [0, 0], sizes = [4, 32], strides = [1, 1]} : vector<4x128xf32> to vector<4x32xf32>
    %222 = arith.negf %221 : vector<4x32xf32>
    %223 = math.exp %222 : vector<4x32xf32>
    %cst_64 = arith.constant 1.000000e+00 : f32
    %224 = vector.broadcast %cst_64 : f32 to vector<4x32xf32>
    %225 = arith.addf %224, %223 : vector<4x32xf32>
    %226 = arith.divf %224, %225 : vector<4x32xf32>
    %227 = vector.extract_strided_slice %220 {offsets = [0, 32], sizes = [4, 32], strides = [1, 1]} : vector<4x128xf32> to vector<4x32xf32>
    %228 = arith.negf %227 : vector<4x32xf32>
    %229 = math.exp %228 : vector<4x32xf32>
    %cst_65 = arith.constant 1.000000e+00 : f32
    %230 = vector.broadcast %cst_65 : f32 to vector<4x32xf32>
    %231 = arith.addf %230, %229 : vector<4x32xf32>
    %232 = arith.divf %230, %231 : vector<4x32xf32>
    %233 = vector.extract_strided_slice %220 {offsets = [0, 64], sizes = [4, 32], strides = [1, 1]} : vector<4x128xf32> to vector<4x32xf32>
    %234 = math.tanh %233 : vector<4x32xf32>
    %235 = vector.extract_strided_slice %220 {offsets = [0, 96], sizes = [4, 32], strides = [1, 1]} : vector<4x128xf32> to vector<4x32xf32>
    %236 = arith.negf %235 : vector<4x32xf32>
    %237 = math.exp %236 : vector<4x32xf32>
    %cst_66 = arith.constant 1.000000e+00 : f32
    %238 = vector.broadcast %cst_66 : f32 to vector<4x32xf32>
    %239 = arith.addf %238, %237 : vector<4x32xf32>
    %240 = arith.divf %238, %239 : vector<4x32xf32>
    %241 = arith.mulf %232, %208 : vector<4x32xf32>
    %242 = arith.mulf %226, %234 : vector<4x32xf32>
    %243 = arith.addf %241, %242 : vector<4x32xf32>
    %244 = math.tanh %243 : vector<4x32xf32>
    %245 = arith.mulf %240, %244 : vector<4x32xf32>
    %246 = vector.extract_strided_slice %245 {offsets = [0, 0], sizes = [2, 32], strides = [1, 1]} : vector<4x32xf32> to vector<2x32xf32>
    %247 = vector.extract_strided_slice %245 {offsets = [2, 0], sizes = [2, 32], strides = [1, 1]} : vector<4x32xf32> to vector<2x32xf32>
    %248 = arith.truncf %245 : vector<4x32xf32> to vector<4x32xbf16>
    %c0_67 = arith.constant 0 : index
    %c0_68 = arith.constant 0 : index
    %249 = vector.load %arg7[%c0_67, %c0_68] : memref<32x256xbf16, #tpu.memory_space<vmem>>, vector<32x256xbf16>
    %cst_69 = arith.constant dense<0.000000e+00> : vector<4x256xf32>
    %250 = tpu.matmul %248, %249, %cst_69 {dimension_numbers = #tpu.dot_dimension_numbers<[1], [0], [0], [1], [0, 0, 1, 1], [], []>} : vector<4x32xbf16>, vector<32x256xbf16>, vector<4x256xf32> -> vector<4x256xf32>
    %251 = vector.extract_strided_slice %137 {offsets = [12, 0], sizes = [4, 128], strides = [1, 1]} : vector<32x128xf32> to vector<4x128xf32>
    %252 = vector.extract_strided_slice %250 {offsets = [0, 0], sizes = [4, 128], strides = [1, 1]} : vector<4x256xf32> to vector<4x128xf32>
    %253 = vector.extract_strided_slice %250 {offsets = [0, 128], sizes = [4, 128], strides = [1, 1]} : vector<4x256xf32> to vector<4x128xf32>
    %254 = arith.select %140, %252, %253 : vector<4x128xi1>, vector<4x128xf32>
    %255 = arith.addf %251, %254 : vector<4x128xf32>
    %256 = vector.extract_strided_slice %255 {offsets = [0, 0], sizes = [4, 32], strides = [1, 1]} : vector<4x128xf32> to vector<4x32xf32>
    %257 = arith.negf %256 : vector<4x32xf32>
    %258 = math.exp %257 : vector<4x32xf32>
    %cst_70 = arith.constant 1.000000e+00 : f32
    %259 = vector.broadcast %cst_70 : f32 to vector<4x32xf32>
    %260 = arith.addf %259, %258 : vector<4x32xf32>
    %261 = arith.divf %259, %260 : vector<4x32xf32>
    %262 = vector.extract_strided_slice %255 {offsets = [0, 32], sizes = [4, 32], strides = [1, 1]} : vector<4x128xf32> to vector<4x32xf32>
    %263 = arith.negf %262 : vector<4x32xf32>
    %264 = math.exp %263 : vector<4x32xf32>
    %cst_71 = arith.constant 1.000000e+00 : f32
    %265 = vector.broadcast %cst_71 : f32 to vector<4x32xf32>
    %266 = arith.addf %265, %264 : vector<4x32xf32>
    %267 = arith.divf %265, %266 : vector<4x32xf32>
    %268 = vector.extract_strided_slice %255 {offsets = [0, 64], sizes = [4, 32], strides = [1, 1]} : vector<4x128xf32> to vector<4x32xf32>
    %269 = math.tanh %268 : vector<4x32xf32>
    %270 = vector.extract_strided_slice %255 {offsets = [0, 96], sizes = [4, 32], strides = [1, 1]} : vector<4x128xf32> to vector<4x32xf32>
    %271 = arith.negf %270 : vector<4x32xf32>
    %272 = math.exp %271 : vector<4x32xf32>
    %cst_72 = arith.constant 1.000000e+00 : f32
    %273 = vector.broadcast %cst_72 : f32 to vector<4x32xf32>
    %274 = arith.addf %273, %272 : vector<4x32xf32>
    %275 = arith.divf %273, %274 : vector<4x32xf32>
    %276 = arith.mulf %267, %243 : vector<4x32xf32>
    %277 = arith.mulf %261, %269 : vector<4x32xf32>
    %278 = arith.addf %276, %277 : vector<4x32xf32>
    %279 = math.tanh %278 : vector<4x32xf32>
    %280 = arith.mulf %275, %279 : vector<4x32xf32>
    %281 = vector.extract_strided_slice %280 {offsets = [0, 0], sizes = [2, 32], strides = [1, 1]} : vector<4x32xf32> to vector<2x32xf32>
    %282 = vector.extract_strided_slice %280 {offsets = [2, 0], sizes = [2, 32], strides = [1, 1]} : vector<4x32xf32> to vector<2x32xf32>
    %283 = arith.truncf %280 : vector<4x32xf32> to vector<4x32xbf16>
    %c0_73 = arith.constant 0 : index
    %c0_74 = arith.constant 0 : index
    %284 = vector.load %arg7[%c0_73, %c0_74] : memref<32x256xbf16, #tpu.memory_space<vmem>>, vector<32x256xbf16>
    %cst_75 = arith.constant dense<0.000000e+00> : vector<4x256xf32>
    %285 = tpu.matmul %283, %284, %cst_75 {dimension_numbers = #tpu.dot_dimension_numbers<[1], [0], [0], [1], [0, 0, 1, 1], [], []>} : vector<4x32xbf16>, vector<32x256xbf16>, vector<4x256xf32> -> vector<4x256xf32>
    %286 = vector.extract_strided_slice %137 {offsets = [16, 0], sizes = [4, 128], strides = [1, 1]} : vector<32x128xf32> to vector<4x128xf32>
    %287 = vector.extract_strided_slice %285 {offsets = [0, 0], sizes = [4, 128], strides = [1, 1]} : vector<4x256xf32> to vector<4x128xf32>
    %288 = vector.extract_strided_slice %285 {offsets = [0, 128], sizes = [4, 128], strides = [1, 1]} : vector<4x256xf32> to vector<4x128xf32>
    %289 = arith.select %140, %287, %288 : vector<4x128xi1>, vector<4x128xf32>
    %290 = arith.addf %286, %289 : vector<4x128xf32>
    %291 = vector.extract_strided_slice %290 {offsets = [0, 0], sizes = [4, 32], strides = [1, 1]} : vector<4x128xf32> to vector<4x32xf32>
    %292 = arith.negf %291 : vector<4x32xf32>
    %293 = math.exp %292 : vector<4x32xf32>
    %cst_76 = arith.constant 1.000000e+00 : f32
    %294 = vector.broadcast %cst_76 : f32 to vector<4x32xf32>
    %295 = arith.addf %294, %293 : vector<4x32xf32>
    %296 = arith.divf %294, %295 : vector<4x32xf32>
    %297 = vector.extract_strided_slice %290 {offsets = [0, 32], sizes = [4, 32], strides = [1, 1]} : vector<4x128xf32> to vector<4x32xf32>
    %298 = arith.negf %297 : vector<4x32xf32>
    %299 = math.exp %298 : vector<4x32xf32>
    %cst_77 = arith.constant 1.000000e+00 : f32
    %300 = vector.broadcast %cst_77 : f32 to vector<4x32xf32>
    %301 = arith.addf %300, %299 : vector<4x32xf32>
    %302 = arith.divf %300, %301 : vector<4x32xf32>
    %303 = vector.extract_strided_slice %290 {offsets = [0, 64], sizes = [4, 32], strides = [1, 1]} : vector<4x128xf32> to vector<4x32xf32>
    %304 = math.tanh %303 : vector<4x32xf32>
    %305 = vector.extract_strided_slice %290 {offsets = [0, 96], sizes = [4, 32], strides = [1, 1]} : vector<4x128xf32> to vector<4x32xf32>
    %306 = arith.negf %305 : vector<4x32xf32>
    %307 = math.exp %306 : vector<4x32xf32>
    %cst_78 = arith.constant 1.000000e+00 : f32
    %308 = vector.broadcast %cst_78 : f32 to vector<4x32xf32>
    %309 = arith.addf %308, %307 : vector<4x32xf32>
    %310 = arith.divf %308, %309 : vector<4x32xf32>
    %311 = arith.mulf %302, %278 : vector<4x32xf32>
    %312 = arith.mulf %296, %304 : vector<4x32xf32>
    %313 = arith.addf %311, %312 : vector<4x32xf32>
    %314 = math.tanh %313 : vector<4x32xf32>
    %315 = arith.mulf %310, %314 : vector<4x32xf32>
    %316 = vector.extract_strided_slice %315 {offsets = [0, 0], sizes = [2, 32], strides = [1, 1]} : vector<4x32xf32> to vector<2x32xf32>
    %317 = vector.extract_strided_slice %315 {offsets = [2, 0], sizes = [2, 32], strides = [1, 1]} : vector<4x32xf32> to vector<2x32xf32>
    %318 = arith.truncf %315 : vector<4x32xf32> to vector<4x32xbf16>
    %c0_79 = arith.constant 0 : index
    %c0_80 = arith.constant 0 : index
    %319 = vector.load %arg7[%c0_79, %c0_80] : memref<32x256xbf16, #tpu.memory_space<vmem>>, vector<32x256xbf16>
    %cst_81 = arith.constant dense<0.000000e+00> : vector<4x256xf32>
    %320 = tpu.matmul %318, %319, %cst_81 {dimension_numbers = #tpu.dot_dimension_numbers<[1], [0], [0], [1], [0, 0, 1, 1], [], []>} : vector<4x32xbf16>, vector<32x256xbf16>, vector<4x256xf32> -> vector<4x256xf32>
    %321 = vector.extract_strided_slice %137 {offsets = [20, 0], sizes = [4, 128], strides = [1, 1]} : vector<32x128xf32> to vector<4x128xf32>
    %322 = vector.extract_strided_slice %320 {offsets = [0, 0], sizes = [4, 128], strides = [1, 1]} : vector<4x256xf32> to vector<4x128xf32>
    %323 = vector.extract_strided_slice %320 {offsets = [0, 128], sizes = [4, 128], strides = [1, 1]} : vector<4x256xf32> to vector<4x128xf32>
    %324 = arith.select %140, %322, %323 : vector<4x128xi1>, vector<4x128xf32>
    %325 = arith.addf %321, %324 : vector<4x128xf32>
    %326 = vector.extract_strided_slice %325 {offsets = [0, 0], sizes = [4, 32], strides = [1, 1]} : vector<4x128xf32> to vector<4x32xf32>
    %327 = arith.negf %326 : vector<4x32xf32>
    %328 = math.exp %327 : vector<4x32xf32>
    %cst_82 = arith.constant 1.000000e+00 : f32
    %329 = vector.broadcast %cst_82 : f32 to vector<4x32xf32>
    %330 = arith.addf %329, %328 : vector<4x32xf32>
    %331 = arith.divf %329, %330 : vector<4x32xf32>
    %332 = vector.extract_strided_slice %325 {offsets = [0, 32], sizes = [4, 32], strides = [1, 1]} : vector<4x128xf32> to vector<4x32xf32>
    %333 = arith.negf %332 : vector<4x32xf32>
    %334 = math.exp %333 : vector<4x32xf32>
    %cst_83 = arith.constant 1.000000e+00 : f32
    %335 = vector.broadcast %cst_83 : f32 to vector<4x32xf32>
    %336 = arith.addf %335, %334 : vector<4x32xf32>
    %337 = arith.divf %335, %336 : vector<4x32xf32>
    %338 = vector.extract_strided_slice %325 {offsets = [0, 64], sizes = [4, 32], strides = [1, 1]} : vector<4x128xf32> to vector<4x32xf32>
    %339 = math.tanh %338 : vector<4x32xf32>
    %340 = vector.extract_strided_slice %325 {offsets = [0, 96], sizes = [4, 32], strides = [1, 1]} : vector<4x128xf32> to vector<4x32xf32>
    %341 = arith.negf %340 : vector<4x32xf32>
    %342 = math.exp %341 : vector<4x32xf32>
    %cst_84 = arith.constant 1.000000e+00 : f32
    %343 = vector.broadcast %cst_84 : f32 to vector<4x32xf32>
    %344 = arith.addf %343, %342 : vector<4x32xf32>
    %345 = arith.divf %343, %344 : vector<4x32xf32>
    %346 = arith.mulf %337, %313 : vector<4x32xf32>
    %347 = arith.mulf %331, %339 : vector<4x32xf32>
    %348 = arith.addf %346, %347 : vector<4x32xf32>
    %349 = math.tanh %348 : vector<4x32xf32>
    %350 = arith.mulf %345, %349 : vector<4x32xf32>
    %351 = vector.extract_strided_slice %350 {offsets = [0, 0], sizes = [2, 32], strides = [1, 1]} : vector<4x32xf32> to vector<2x32xf32>
    %352 = vector.extract_strided_slice %350 {offsets = [2, 0], sizes = [2, 32], strides = [1, 1]} : vector<4x32xf32> to vector<2x32xf32>
    %353 = arith.truncf %350 : vector<4x32xf32> to vector<4x32xbf16>
    %c0_85 = arith.constant 0 : index
    %c0_86 = arith.constant 0 : index
    %354 = vector.load %arg7[%c0_85, %c0_86] : memref<32x256xbf16, #tpu.memory_space<vmem>>, vector<32x256xbf16>
    %cst_87 = arith.constant dense<0.000000e+00> : vector<4x256xf32>
    %355 = tpu.matmul %353, %354, %cst_87 {dimension_numbers = #tpu.dot_dimension_numbers<[1], [0], [0], [1], [0, 0, 1, 1], [], []>} : vector<4x32xbf16>, vector<32x256xbf16>, vector<4x256xf32> -> vector<4x256xf32>
    %356 = vector.extract_strided_slice %137 {offsets = [24, 0], sizes = [4, 128], strides = [1, 1]} : vector<32x128xf32> to vector<4x128xf32>
    %357 = vector.extract_strided_slice %355 {offsets = [0, 0], sizes = [4, 128], strides = [1, 1]} : vector<4x256xf32> to vector<4x128xf32>
    %358 = vector.extract_strided_slice %355 {offsets = [0, 128], sizes = [4, 128], strides = [1, 1]} : vector<4x256xf32> to vector<4x128xf32>
    %359 = arith.select %140, %357, %358 : vector<4x128xi1>, vector<4x128xf32>
    %360 = arith.addf %356, %359 : vector<4x128xf32>
    %361 = vector.extract_strided_slice %360 {offsets = [0, 0], sizes = [4, 32], strides = [1, 1]} : vector<4x128xf32> to vector<4x32xf32>
    %362 = arith.negf %361 : vector<4x32xf32>
    %363 = math.exp %362 : vector<4x32xf32>
    %cst_88 = arith.constant 1.000000e+00 : f32
    %364 = vector.broadcast %cst_88 : f32 to vector<4x32xf32>
    %365 = arith.addf %364, %363 : vector<4x32xf32>
    %366 = arith.divf %364, %365 : vector<4x32xf32>
    %367 = vector.extract_strided_slice %360 {offsets = [0, 32], sizes = [4, 32], strides = [1, 1]} : vector<4x128xf32> to vector<4x32xf32>
    %368 = arith.negf %367 : vector<4x32xf32>
    %369 = math.exp %368 : vector<4x32xf32>
    %cst_89 = arith.constant 1.000000e+00 : f32
    %370 = vector.broadcast %cst_89 : f32 to vector<4x32xf32>
    %371 = arith.addf %370, %369 : vector<4x32xf32>
    %372 = arith.divf %370, %371 : vector<4x32xf32>
    %373 = vector.extract_strided_slice %360 {offsets = [0, 64], sizes = [4, 32], strides = [1, 1]} : vector<4x128xf32> to vector<4x32xf32>
    %374 = math.tanh %373 : vector<4x32xf32>
    %375 = vector.extract_strided_slice %360 {offsets = [0, 96], sizes = [4, 32], strides = [1, 1]} : vector<4x128xf32> to vector<4x32xf32>
    %376 = arith.negf %375 : vector<4x32xf32>
    %377 = math.exp %376 : vector<4x32xf32>
    %cst_90 = arith.constant 1.000000e+00 : f32
    %378 = vector.broadcast %cst_90 : f32 to vector<4x32xf32>
    %379 = arith.addf %378, %377 : vector<4x32xf32>
    %380 = arith.divf %378, %379 : vector<4x32xf32>
    %381 = arith.mulf %372, %348 : vector<4x32xf32>
    %382 = arith.mulf %366, %374 : vector<4x32xf32>
    %383 = arith.addf %381, %382 : vector<4x32xf32>
    %384 = math.tanh %383 : vector<4x32xf32>
    %385 = arith.mulf %380, %384 : vector<4x32xf32>
    %386 = vector.extract_strided_slice %385 {offsets = [0, 0], sizes = [2, 32], strides = [1, 1]} : vector<4x32xf32> to vector<2x32xf32>
    %387 = vector.extract_strided_slice %385 {offsets = [2, 0], sizes = [2, 32], strides = [1, 1]} : vector<4x32xf32> to vector<2x32xf32>
    %388 = arith.truncf %385 : vector<4x32xf32> to vector<4x32xbf16>
    %c0_91 = arith.constant 0 : index
    %c0_92 = arith.constant 0 : index
    %389 = vector.load %arg7[%c0_91, %c0_92] : memref<32x256xbf16, #tpu.memory_space<vmem>>, vector<32x256xbf16>
    %cst_93 = arith.constant dense<0.000000e+00> : vector<4x256xf32>
    %390 = tpu.matmul %388, %389, %cst_93 {dimension_numbers = #tpu.dot_dimension_numbers<[1], [0], [0], [1], [0, 0, 1, 1], [], []>} : vector<4x32xbf16>, vector<32x256xbf16>, vector<4x256xf32> -> vector<4x256xf32>
    %391 = vector.extract_strided_slice %137 {offsets = [28, 0], sizes = [4, 128], strides = [1, 1]} : vector<32x128xf32> to vector<4x128xf32>
    %392 = vector.extract_strided_slice %390 {offsets = [0, 0], sizes = [4, 128], strides = [1, 1]} : vector<4x256xf32> to vector<4x128xf32>
    %393 = vector.extract_strided_slice %390 {offsets = [0, 128], sizes = [4, 128], strides = [1, 1]} : vector<4x256xf32> to vector<4x128xf32>
    %394 = arith.select %140, %392, %393 : vector<4x128xi1>, vector<4x128xf32>
    %395 = arith.addf %391, %394 : vector<4x128xf32>
    %396 = vector.extract_strided_slice %395 {offsets = [0, 0], sizes = [4, 32], strides = [1, 1]} : vector<4x128xf32> to vector<4x32xf32>
    %397 = arith.negf %396 : vector<4x32xf32>
    %398 = math.exp %397 : vector<4x32xf32>
    %cst_94 = arith.constant 1.000000e+00 : f32
    %399 = vector.broadcast %cst_94 : f32 to vector<4x32xf32>
    %400 = arith.addf %399, %398 : vector<4x32xf32>
    %401 = arith.divf %399, %400 : vector<4x32xf32>
    %402 = vector.extract_strided_slice %395 {offsets = [0, 32], sizes = [4, 32], strides = [1, 1]} : vector<4x128xf32> to vector<4x32xf32>
    %403 = arith.negf %402 : vector<4x32xf32>
    %404 = math.exp %403 : vector<4x32xf32>
    %cst_95 = arith.constant 1.000000e+00 : f32
    %405 = vector.broadcast %cst_95 : f32 to vector<4x32xf32>
    %406 = arith.addf %405, %404 : vector<4x32xf32>
    %407 = arith.divf %405, %406 : vector<4x32xf32>
    %408 = vector.extract_strided_slice %395 {offsets = [0, 64], sizes = [4, 32], strides = [1, 1]} : vector<4x128xf32> to vector<4x32xf32>
    %409 = math.tanh %408 : vector<4x32xf32>
    %410 = vector.extract_strided_slice %395 {offsets = [0, 96], sizes = [4, 32], strides = [1, 1]} : vector<4x128xf32> to vector<4x32xf32>
    %411 = arith.negf %410 : vector<4x32xf32>
    %412 = math.exp %411 : vector<4x32xf32>
    %cst_96 = arith.constant 1.000000e+00 : f32
    %413 = vector.broadcast %cst_96 : f32 to vector<4x32xf32>
    %414 = arith.addf %413, %412 : vector<4x32xf32>
    %415 = arith.divf %413, %414 : vector<4x32xf32>
    %416 = arith.mulf %407, %383 : vector<4x32xf32>
    %417 = arith.mulf %401, %409 : vector<4x32xf32>
    %418 = arith.addf %416, %417 : vector<4x32xf32>
    %419 = math.tanh %418 : vector<4x32xf32>
    %420 = arith.mulf %415, %419 : vector<4x32xf32>
    %421 = vector.extract_strided_slice %420 {offsets = [0, 0], sizes = [2, 32], strides = [1, 1]} : vector<4x32xf32> to vector<2x32xf32>
    %422 = vector.extract_strided_slice %420 {offsets = [2, 0], sizes = [2, 32], strides = [1, 1]} : vector<4x32xf32> to vector<2x32xf32>
    %423 = vector.shape_cast %176 : vector<2x32xf32> to vector<2x1x32xf32>
    %424 = vector.shape_cast %211 : vector<2x32xf32> to vector<2x1x32xf32>
    %425 = vector.shape_cast %246 : vector<2x32xf32> to vector<2x1x32xf32>
    %426 = vector.shape_cast %281 : vector<2x32xf32> to vector<2x1x32xf32>
    %427 = vector.shape_cast %316 : vector<2x32xf32> to vector<2x1x32xf32>
    %428 = vector.shape_cast %351 : vector<2x32xf32> to vector<2x1x32xf32>
    %429 = vector.shape_cast %386 : vector<2x32xf32> to vector<2x1x32xf32>
    %430 = vector.shape_cast %421 : vector<2x32xf32> to vector<2x1x32xf32>
    %431 = tpu.concatenate %423, %424, %425, %426, %427, %428, %429, %430 in 1 : vector<2x1x32xf32>, vector<2x1x32xf32>, vector<2x1x32xf32>, vector<2x1x32xf32>, vector<2x1x32xf32>, vector<2x1x32xf32>, vector<2x1x32xf32>, vector<2x1x32xf32> -> vector<2x8x32xf32>
    %432 = vector.shape_cast %431 : vector<2x8x32xf32> to vector<16x32xf32>
    %433 = vector.shape_cast %422 : vector<2x32xf32> to vector<2x1x32xf32>
    %434 = vector.shape_cast %387 : vector<2x32xf32> to vector<2x1x32xf32>
    %435 = vector.shape_cast %352 : vector<2x32xf32> to vector<2x1x32xf32>
    %436 = vector.shape_cast %317 : vector<2x32xf32> to vector<2x1x32xf32>
    %437 = vector.shape_cast %282 : vector<2x32xf32> to vector<2x1x32xf32>
    %438 = vector.shape_cast %247 : vector<2x32xf32> to vector<2x1x32xf32>
    %439 = vector.shape_cast %212 : vector<2x32xf32> to vector<2x1x32xf32>
    %440 = vector.shape_cast %177 : vector<2x32xf32> to vector<2x1x32xf32>
    %441 = tpu.concatenate %433, %434, %435, %436, %437, %438, %439, %440 in 1 : vector<2x1x32xf32>, vector<2x1x32xf32>, vector<2x1x32xf32>, vector<2x1x32xf32>, vector<2x1x32xf32>, vector<2x1x32xf32>, vector<2x1x32xf32>, vector<2x1x32xf32> -> vector<2x8x32xf32>
    %442 = vector.shape_cast %441 : vector<2x8x32xf32> to vector<16x32xf32>
    %443 = arith.truncf %432 : vector<16x32xf32> to vector<16x32xbf16>
    %c0_97 = arith.constant 0 : index
    %c0_98 = arith.constant 0 : index
    %444 = vector.load %arg8[%c0_97, %c0_98] : memref<64x256xbf16, #tpu.memory_space<vmem>>, vector<32x256xbf16>
    %cst_99 = arith.constant dense<0.000000e+00> : vector<16x256xf32>
    %445 = tpu.matmul %443, %444, %cst_99 {dimension_numbers = #tpu.dot_dimension_numbers<[1], [0], [0], [1], [0, 0, 1, 1], [], []>} : vector<16x32xbf16>, vector<32x256xbf16>, vector<16x256xf32> -> vector<16x256xf32>
    %446 = arith.truncf %442 : vector<16x32xf32> to vector<16x32xbf16>
    %c32 = arith.constant 32 : index
    %c0_100 = arith.constant 0 : index
    %447 = vector.load %arg8[%c32, %c0_100] : memref<64x256xbf16, #tpu.memory_space<vmem>>, vector<32x256xbf16>
    %cst_101 = arith.constant dense<0.000000e+00> : vector<16x256xf32>
    %448 = tpu.matmul %446, %447, %cst_101 {dimension_numbers = #tpu.dot_dimension_numbers<[1], [0], [0], [1], [0, 0, 1, 1], [], []>} : vector<16x32xbf16>, vector<32x256xbf16>, vector<16x256xf32> -> vector<16x256xf32>
    %449 = arith.addf %445, %448 : vector<16x256xf32>
    %450 = vector.broadcast %10 : vector<1x256xf32> to vector<16x256xf32>
    %451 = arith.addf %449, %450 : vector<16x256xf32>
    %452 = vector.shape_cast %451 : vector<16x256xf32> to vector<2x8x256xf32>
    %c0_102 = arith.constant 0 : index
    %c0_103 = arith.constant 0 : index
    %c0_104 = arith.constant 0 : index
    %453 = vector.load %arg10[%c0_102, %c0_103, %c0_104] : memref<2x8x256xf32, #tpu.memory_space<vmem>>, vector<2x8x256xf32>
    tpu.vector_store %arg10[%c0_102, %c0_103, %c0_104], %452 {strides = array<i32>} : memref<2x8x256xf32, #tpu.memory_space<vmem>>, vector<2x8x256xf32>,
    return
  }
}

</mosaic_0001>

<bundles_post_ra>
// kernel: eq.8
= control target key start
LH: loop header
LB: loop body
LE: loop exit
PB: predicated region body
PF: predicated region fallthrough
CT: control target
= control target key end

     0   :  { %s67_s10 = smov 14   ;;  %s68_s11 = smov 10   ;;  %vm3_vm0 = vcmask 15360   ;;  %vm9_vm1 = vcmask 130160   ;;  %vm15_vm2 = vcmask 113760   ;;  %vm21_vm3 = vcmask 97360   ;;  %s111_s0 = inlined_call_operand.vmem [shape: s32[8,2], index: 0, kind: input, shape index: {}]   ;;  %s112_s1 = inlined_call_operand.vmem [shape: s32[16], index: 1, kind: output, shape index: {}]  }
   0x1   :  { %v53_v0 = vld [vmem:[%s111_s0 + $0x7] sm:$0x1]   ;;  %v55_v1 = vld [vmem:[%s111_s0 + $0x5] sm:$0x1]   ;;  %v54_v2 = vld [vmem:[%s111_s0 + $0x6] sm:$0x1]  }
   0x2   :  { %7 = vrot.lane.b32.xlu0 %v53_v0, %s67_s10  ;;  %19 = vrot.lane.b32.xlu1 %v55_v1, %s68_s11  ;;  %v56_v3 = vld [vmem:[%s111_s0 + $0x4] sm:$0x1]   ;;  %v2_v4 = vld [vmem:[%s111_s0] sm:$0x1]   ;;  %s69_s18 = smov 12   ;;  %s70_s19 = smov 8  }
   0x3   :  { %4 = vst.msk [vmem:[#allocation0] sm:$0x1] %vm3_vm0, %v2_v4   ;;  %v57_v5 = vld [vmem:[%s111_s0 + $0x3] sm:$0x1]   ;;  %v58_v6 = vld [vmem:[%s111_s0 + $0x2] sm:$0x1]  }
   0x4   :  { %s71_s24 = smov 6   ;;  %s72_s25 = smov 4   ;;  %v59_v7 = vld [vmem:[%s111_s0 + $0x1] sm:$0x1]   ;;  %vm27_vm4 = vcmask 80960   ;;  %vm33_vm5 = vcmask 64560  }
   0x5   :  { %s73_s0 = smov 2   ;;  %vm39_vm6 = vcmask 48160   ;;  %vm45_vm7 = vcmask 31760  }
   0x6   :  { %13 = vrot.lane.b32.xlu0 %v54_v2, %s69_s18  ;;  %25 = vrot.lane.b32.xlu1 %v56_v3, %s70_s19 }
   0xa   :  { %31 = vrot.lane.b32.xlu0 %v57_v5, %s71_s24  ;;  %37 = vrot.lane.b32.xlu1 %v58_v6, %s72_s25 }
   0xe   :  { %43 = vrot.lane.b32.xlu0 %v59_v7, %s73_s0 }
  0x74   :  { %v8_v8 = vpop.permute.xlu0 %7   ;;  %v20_v9 = vpop.permute.xlu1 %19  }
  0x75   :  { %10 = vst.msk [vmem:[#allocation0] sm:$0x1] %vm9_vm1, %v8_v8  }
  0x78   :  { %v14_v10 = vpop.permute.xlu0 %13   ;;  %v26_v11 = vpop.permute.xlu1 %25  }
  0x79   :  { %16 = vst.msk [vmem:[#allocation0] sm:$0x1] %vm15_vm2, %v14_v10  }
  0x7a   :  { %22 = vst.msk [vmem:[#allocation0] sm:$0x1] %vm21_vm3, %v20_v9  }
  0x7b   :  { %28 = vst.msk [vmem:[#allocation0] sm:$0x1] %vm27_vm4, %v26_v11  }
  0x7c   :  { %v32_v12 = vpop.permute.xlu0 %31   ;;  %v38_v13 = vpop.permute.xlu1 %37  }
  0x7d   :  { %34 = vst.msk [vmem:[#allocation0] sm:$0x1] %vm33_vm5, %v32_v12  }
  0x7e   :  { %40 = vst.msk [vmem:[#allocation0] sm:$0x1] %vm39_vm6, %v38_v13  }
  0x80   :  { %v44_v14 = vpop.permute.xlu0 %43  }
  0x81   :  { %46 = vst.msk [vmem:[#allocation0] sm:$0x1] %vm45_vm7, %v44_v14  }
  0x88   :  { %v50_v15 = vld [vmem:[#allocation0] sm:$0x1] }
  0x89   :  { %52 = vst [vmem:[%s112_s1] sm:$0x1] %v50_v15 }

// kernel: bert_bilstm_forward.1
= control target key start
LH: loop header
LB: loop body
LE: loop exit
PB: predicated region body
PF: predicated region fallthrough
CT: control target
= control target key end

     0   :  { %v2281_v2 = vmov 0   ;;  %vm108_vm0 = vcmask 261120   ;;  %s2873_s0 = inlined_call_operand.vmem [shape: f32[16,32], index: 0, kind: input, shape index: {}]   ;;  %s2874_s1 = inlined_call_operand.vmem [shape: f32[16,16], index: 1, kind: input, shape index: {}]   ;;  %s2875_s2 = inlined_call_operand.vmem [shape: bf16[32,384], index: 2, kind: input, shape index: {}]   ;;  %s2876_s3 = inlined_call_operand.vmem [shape: bf16[128,32], index: 3, kind: input, shape index: {}]   ;;  %s2877_s4 = inlined_call_operand.vmem [shape: bf16[32,64], index: 4, kind: input, shape index: {}]   ;;  %s2878_s5 = inlined_call_operand.vmem [shape: bf16[64,32], index: 5, kind: input, shape index: {}]   ;;  %s2879_s6 = inlined_call_operand.vmem [shape: bf16[32,256], index: 6, kind: input, shape index: {}]   ;;  %s2880_s7 = inlined_call_operand.vmem [shape: bf16[32,256], index: 7, kind: input, shape index: {}]   ;;  %s2881_s8 = inlined_call_operand.vmem [shape: bf16[64,256], index: 8, kind: input, shape index: {}]   ;;  %s2882_s9 = inlined_call_operand.vmem [shape: f32[11,384], index: 9, kind: input, shape index: {}]   ;;  %s2883_s10 = inlined_call_operand.hbm [shape: f32[2,8,256], index: 10, kind: output, shape index: {}]  }
   0x1   :  { %v2127_v0 = vld [vmem:[%s2875_s2 + $0x4] ss:$12 sps:$4 sm:$0xff]   ;;  %v2129_v1 = vld [vmem:[%s2875_s2] ss:$12 sps:$4 sm:$0xff]   ;;  %144 = vmatprep.mubr.bf16.mxu1 %v2281_v2  ;;  %v2130_v3 = vld [vmem:[%s2875_s2 + $0x1c] ss:$12 sps:$4 sm:$0xff]  }
   0x2   :  { %112 = vmatprep.subr.bf16.mxu1 %v2127_v0  ;;  %v2132_v4 = vld [vmem:[%s2875_s2 + $0x18] ss:$12 sps:$4 sm:$0xff]   ;;  %v2366_v6 = vld [vmem:[%s2873_s0 + $0x8] sm:$0xff] }
   0x3   :  { %113 = vmatpush1.bf16.msra.mxu1 %v2129_v1  ;;  %v2361_v5 = vld [vmem:[%s2873_s0] sm:$0xff] }
   0x4   :  { %114 = vmatprep.subr.bf16.mxu1 %v2130_v3  ;;  %v51_v7 = vpack.c.bf16 %v2366_v6, %v2361_v5 }
   0x7   :  { %115 = vmatpush1.bf16.msra.mxu1 %v2132_v4 }
   0xa   :  { %1977 = vmatmul.mubr.msk.bf16.vlgmr.msra.gmra.mrb[0].mxu1 %vm108_vm0, %v51_v7 }
   0xb   :  { %15 = vsyncpa [#allocation3], 0  ;;  %v2282_v8 = vmov 0.0   ;;  %vm2283_vm1 = vmmov 0   ;;  %v61_v9 = vlaneseq  ;;  %v2133_v26 = vld [vmem:[%s2875_s2 + $0x8] ss:$12 sps:$4 sm:$0xff]  }
   0xc   :  { %2062 = vmatprep.subr.bf16.mxu0 %v2282_v8  ;;  %2054 = vmatprep.subr.bf16.mxu1 %v2282_v8  ;;  %v37_v12 = vld [vmem:[%s2882_s9] ss:$8 sm:$0x7]  ;;  %vm241_vm2 = vcmask 130048   ;;  %v2138_v60 = vld [vmem:[%s2876_s3 + $0x18] sm:$0xff]   ;;  %vm561_vm3 = vcmask 523264  }
   0xd   :  { %2064 = vmatprep.mubr.msk.bf16.mxu0 %vm2283_vm1, %v2282_v8  ;;  %2058 = vmatprep.mubr.msk.bf16.mxu1 %vm2283_vm1, %v2282_v8  ;;  %v2377_v10 = vshrl.u32 %v61_v9, 7  ;;  %v2134_v27 = vld [vmem:[%s2875_s2 + $0x20] ss:$12 sps:$4 sm:$0xff]   ;;  %v2137_v59 = vld [vmem:[%s2876_s3 + $0x10] sm:$0xff]   ;;  %vm741_vm5 = vcmask 1041408   ;;  %vm743_vm6 = vcmask 1043456  }
   0xe   :  { %2055 = vmatpush3.bf16.msra.mxu1 %v2133_v26  ;;  %v198_v28 = vld [vmem:[%s2874_s1] sm:$0xff]  ;;  %v199_v30 = vld [vmem:[%s2874_s1 + $0x8] sm:$0xff]  ;;  %v2141_v63 = vld [vmem:[%s2876_s3 + $0x30] sm:$0xff]   ;;  %vm745_vm7 = vcmask 1045504   ;;  %s2284_s21 = smov 64   ;;  %s2285_s22 = smov 32  }
   0xf   :  { %v2380_v11 = vsub.s32 0, %v2377_v10  ;;  %v67_v13 = vsub.s32 1, %v2377_v10  ;;  %2056 = vmatprep.subr.bf16.mxu1 %v2282_v8  ;;  %v71_v48 = vsub.s32 2, %v2377_v10  ;;  %v2135_v57 = vld [vmem:[%s2876_s3] sm:$0xff]   ;;  %v2136_v58 = vld [vmem:[%s2876_s3 + $0x8] sm:$0xff]   ;;  %vm758_vm4 = vcmp.lt.s32.totalorder %v2377_v10, 2 }
  0x10   :  { %v2139_v61 = vld [vmem:[%s2876_s3 + $0x20] sm:$0xff]   ;;  %v2140_v62 = vld [vmem:[%s2876_s3 + $0x28] sm:$0xff]   ;;  %vm1667_vm8 = vcmask 1040384   ;;  %vm1672_vm9 = vcmask 1042432   ;;  %vm1677_vm10 = vcmask 1044480   ;;  %vm1682_vm11 = vcmask 1046528  }
  0x11   :  { %v64_v14 = vrot.slane %v37_v12, %v2380_v11  ;;  %v68_v16 = vrot.slane %v37_v12, %v67_v13  ;;  %v72_v51 = vrot.slane %v37_v12, %v71_v48  ;;  %v39_v48 = vld [vmem:[%s2882_s9 + $0x2] ss:$0 sm:$0xff] }
  0x12   :  { %2057 = vmatpush3.bf16.msra.mxu1 %v2134_v27 }
  0x13   :  { %2068 = vmatprep.subr.bf16.mxu1 %v2282_v8 }
  0x15   :  { %2059 = vmatmul.mubr.msk.bf16.vlgmr.msra.gmra.mrb[4].mxu1 %vm108_vm0, %v51_v7 }
  0x16   :  { %2070 = vmatprep.mubr.msk.bf16.mxu1 %vm2283_vm1, %v2282_v8 }
  0xdd   :  { %v146_v15 = vpop.f32.mrb[0].mxu1 }
  0xde   :  { %v148_v17 = vpop.f32.mrb[1].mxu1  ;;  %v147_v19 = vadd.f32 %v146_v15, %v64_v14 }
  0xdf   :  { %v150_v18 = vpop.f32.mrb[2].mxu1  ;;  %v149_v22 = vadd.f32 %v148_v17, %v68_v16 }
  0xe0   :  { %v151_v20 = vadd.f32 %v150_v18, %v64_v14  ;;  %v152_v21 = vpop.f32.mrb[3].mxu1  ;;  %v2142_v14 = vld [vmem:[%s2876_s3 + $0x38] sm:$0xff]  }
  0xe1   :  { %v153_v23 = vadd.f32 %v152_v21, %v68_v16 }
  0xe2   :  { %v196_v24 = vpack.c.bf16 %v151_v20, %v147_v19  ;;  %v38_v20 = vld [vmem:[%s2882_s9 + $0x1] ss:$0 sm:$0xff] }
  0xe3   :  { %v197_v25 = vpack.c.bf16 %v153_v23, %v149_v22 }
  0xe5   :  { %2063 = vmatpush3.bf16.xpose.msra.mxu0 %v197_v25 }
  0xe6   :  { %2074 = vmatprep.subr.bf16.mxu0 %v2282_v8 }
  0xe8   :  { %v189_v49 = vpop.f32.mrb[4].mxu1 }
  0xe9   :  { %v2060_v50 = vpop.f32.mrb[5].mxu1  ;;  %v190_v54 = vadd.f32 %v189_v49, %v72_v51 }
  0xea   :  { %v192_v52 = vpop.f32.mrb[6].mxu1 }
  0xeb   :  { %v2061_v53 = vpop.f32.mrb[7].mxu1  ;;  %v193_v55 = vadd.f32 %v192_v52, %v72_v51 }
  0xec   :  { %2065 = vmatmul.mubr.bf16.vlgmr.msra.gmra.mrb[0].mxu0 %v196_v24  ;;  %v40_v53 = vld [vmem:[%s2882_s9 + $0x3] ss:$0 sm:$0xff] }
  0xed   :  { %2090 = vmatprep.mubr.msk.bf16.mxu0 %vm2283_vm1, %v2282_v8  ;;  %v265_v56 = vpack.c.bf16 %v193_v55, %v190_v54  ;;  %2075 = vmatpush3.bf16.msra.mxu0 %v2135_v57 }
  0xee   :  { %2076 = vmatprep.subr.bf16.mxu0 %v2282_v8 }
  0xef   :  { %2069 = vmatpush3.bf16.msra.mxu1 %v265_v56 }
  0xf0   :  { %2094 = vmatprep.subr.bf16.mxu1 %v2282_v8 }
  0xf1   :  { %2077 = vmatpush3.bf16.msra.mxu0 %v2136_v58  ;;  %v2145_v58 = vld [vmem:[%s2878_s5] sm:$0xff]  }
  0xf2   :  { %2078 = vmatprep.subr.bf16.mxu0 %v2282_v8 }
  0xf5   :  { %2079 = vmatpush3.bf16.msra.mxu0 %v2137_v59  ;;  %v2146_v59 = vld [vmem:[%s2878_s5 + $0x8] sm:$0xff]  }
  0xf6   :  { %2080 = vmatprep.subr.bf16.mxu0 %v2282_v8 }
  0xf9   :  { %2081 = vmatpush3.bf16.msra.mxu0 %v2138_v60  ;;  %v2147_v60 = vld [vmem:[%s2878_s5 + $0x10] sm:$0xff]  }
  0xfa   :  { %2082 = vmatprep.subr.bf16.mxu0 %v2282_v8 }
  0xfd   :  { %2083 = vmatpush3.bf16.msra.mxu0 %v2139_v61  ;;  %v2148_v61 = vld [vmem:[%s2878_s5 + $0x18] sm:$0xff]  }
  0xfe   :  { %2084 = vmatprep.subr.bf16.mxu0 %v2282_v8 }
 0x101   :  { %2085 = vmatpush3.bf16.msra.mxu0 %v2140_v62  ;;  %v41_v62 = vld [vmem:[%s2882_s9 + $0x4] ss:$0 sm:$0xff] }
 0x102   :  { %2086 = vmatprep.subr.bf16.mxu0 %v2282_v8 }
 0x105   :  { %2087 = vmatpush3.bf16.msra.mxu0 %v2141_v63 }
 0x106   :  { %2088 = vmatprep.subr.bf16.mxu0 %v2282_v8 }
 0x109   :  { %2089 = vmatpush3.bf16.msra.mxu0 %v2142_v14 }
 0x1bf   :  { %v234_v29 = vpop.f32.mrb[0].mxu0 }
 0x1c0   :  { %v235_v31 = vadd.f32 %v234_v29, %v198_v28  ;;  %v2066_v32 = vpop.f32.mrb[1].mxu0 }
 0x1c1   :  { %v237_v33 = vpop.f32.mrb[2].mxu0 }
 0x1c2   :  { %v238_v34 = vadd.f32 %v237_v33, %v199_v30  ;;  %v2067_v35 = vpop.f32.mrb[3].mxu0  ;;  %v242_v36 = vsel %vm241_vm2, %v235_v31, -inf }
 0x1c3   :  { %243 = vmax.xlane.f32.xlu0 %v242_v36 }
 0x1c4   :  { %v245_v37 = vsel %vm241_vm2, %v238_v34, -inf }
 0x1c7   :  { %246 = vmax.xlane.f32.xlu0 %v245_v37 }
 0x250   :  { %v244_v38 = vpop.xlane.xlu0 %243 }
 0x251   :  { %v248_v39 = vsub.f32 %v235_v31, %v244_v38 }
 0x253   :  { %v250_v40 = vmul.f32 1.442695, %v248_v39 }
 0x254   :  { %v247_v41 = vpop.xlane.xlu0 %246 }
 0x255   :  { %2173 = vpow2.f32 %v250_v40  ;;  %v249_v42 = vsub.f32 %v238_v34, %v247_v41  ;;  %v2144_v40 = vld [vmem:[%s2877_s4 + $0x8] sm:$0xff]  }
 0x257   :  { %v252_v43 = vmul.f32 1.442695, %v249_v42 }
 0x259   :  { %2175 = vpow2.f32 %v252_v43 }
 0x25f   :  { %v2174_v44 = vpop.eup %2173 }
 0x260   :  { %v254_v45 = vsel %vm241_vm2, %v2174_v44, 0.0 }
 0x261   :  { %255 = vadd.xlane.f32.xlu1 %v254_v45 }
 0x263   :  { %v2176_v46 = vpop.eup %2175 }
 0x264   :  { %v257_v47 = vsel %vm241_vm2, %v2176_v46, 0.0 }
 0x265   :  { %258 = vadd.xlane.f32.xlu1 %v257_v47 }
 0x2ee   :  { %v256_v0 = vpop.xlane.xlu1 %255 }
 0x2ef   :  { %2177 = vrcp.f32 %v256_v0 }
 0x2f2   :  { %v259_v1 = vpop.xlane.xlu1 %258 }
 0x2f3   :  { %2179 = vrcp.f32 %v259_v1 }
 0x2f9   :  { %v2178_v3 = vpop.eup %2177 }
 0x2fa   :  { %v262_v7 = vmul.f32 %v2178_v3, %v2174_v44 }
 0x2fd   :  { %v2180_v4 = vpop.eup %2179 }
 0x2fe   :  { %v263_v9 = vmul.f32 %v2180_v4, %v2176_v46 }
 0x300   :  { %v264_v12 = vpack.c.bf16 %v263_v9, %v262_v7 }
 0x302   :  { %2071 = vmatmul.mubr.msk.bf16.vlgmr.msra.gmra.mrb[8].mxu1 %vm241_vm2, %v264_v12 }
 0x303   :  { %2098 = vmatprep.mubr.msk.bf16.mxu1 %vm2283_vm1, %v2282_v8 }
 0x3d5   :  { %v303_v15 = vpop.f32.mrb[8].mxu1 }
 0x3d6   :  { %v2072_v16 = vpop.f32.mrb[9].mxu1 }
 0x3d7   :  { %v306_v17 = vpop.f32.mrb[10].mxu1 }
 0x3d8   :  { %v310_v18 = vpack.c.bf16 %v306_v17, %v303_v15  ;;  %v2073_v19 = vpop.f32.mrb[11].mxu1 }
 0x3da   :  { %2091 = vmatmul.mubr.bf16.vlgmr.msra.gmra.mrb[4].mxu0 %v310_v18 }
 0x3db   :  { %818 = vmatprep.mubr.bf16.mxu0 %v2281_v2 }
 0x4ad   :  { %v409_v21 = vpop.f32.mrb[4].mxu0 }
 0x4ae   :  { %v410_v22 = vadd.f32 %v409_v21, %v38_v20  ;;  %v2092_v23 = vpop.f32.mrb[5].mxu0 }
 0x4af   :  { %v412_v24 = vpop.f32.mrb[6].mxu0 }
 0x4b0   :  { %v413_v25 = vadd.f32 %v412_v24, %v38_v20  ;;  %v2093_v26 = vpop.f32.mrb[7].mxu0  ;;  %v416_v27 = vadd.f32 %v410_v22, %v2361_v5 }
 0x4b2   :  { %v418_v28 = vsel %vm108_vm0, %v416_v27, 0.0  ;;  %v417_v29 = vadd.f32 %v413_v25, %v2366_v6  ;;  %v2143_v6 = vld [vmem:[%s2877_s4] sm:$0xff]  }
 0x4b3   :  { %419 = vadd.xlane.f32.xlu0 %v418_v28  ;;  %2095 = vmatpush3.bf16.msra.mxu1 %v2143_v6 }
 0x4b4   :  { %v421_v30 = vsel %vm108_vm0, %v417_v29, 0.0  ;;  %2096 = vmatprep.subr.bf16.mxu1 %v2282_v8 }
 0x4b5   :  { %422 = vadd.xlane.f32.xlu1 %v421_v30  ;;  %v42_v30 = vld [vmem:[%s2882_s9 + $0x5] ss:$0 sm:$0xff] }
 0x4b7   :  { %2097 = vmatpush3.bf16.msra.mxu1 %v2144_v40 }
 0x4b8   :  { %2102 = vmatprep.subr.bf16.mxu1 %v2282_v8 }
 0x540   :  { %v420_v31 = vpop.xlane.xlu0 %419 }
 0x541   :  { %v425_v32 = vmul.f32 0.03125, %v420_v31 }
 0x542   :  { %v423_v33 = vpop.xlane.xlu1 %422 }
 0x543   :  { %v427_v34 = vsub.f32 %v416_v27, %v425_v32  ;;  %v426_v35 = vmul.f32 0.03125, %v423_v33 }
 0x545   :  { %v428_v36 = vsub.f32 %v417_v29, %v426_v35  ;;  %v429_v37 = vmul.f32 %v427_v34, %v427_v34 }
 0x547   :  { %v431_v38 = vsel %vm108_vm0, %v429_v37, 0.0  ;;  %v430_v39 = vmul.f32 %v428_v36, %v428_v36 }
 0x548   :  { %432 = vadd.xlane.f32.xlu0 %v431_v38 }
 0x549   :  { %v434_v5 = vsel %vm108_vm0, %v430_v39, 0.0 }
 0x54a   :  { %435 = vadd.xlane.f32.xlu1 %v434_v5 }
 0x5d5   :  { %v433_v41 = vpop.xlane.xlu0 %432 }
 0x5d6   :  { %v437_v42 = vmul.f32 0.03125, %v433_v41 }
 0x5d7   :  { %v436_v43 = vpop.xlane.xlu1 %435 }
 0x5d8   :  { %v439_v44 = vadd.f32 1e-12, %v437_v42  ;;  %v438_v45 = vmul.f32 0.03125, %v436_v43 }
 0x5da   :  { %2181 = vrsqrt.f32 %v439_v44  ;;  %v440_v46 = vadd.f32 1e-12, %v438_v45 }
 0x5dc   :  { %2183 = vrsqrt.f32 %v440_v46 }
 0x5e4   :  { %v2182_v47 = vpop.eup %2181 }
 0x5e5   :  { %v443_v49 = vmul.f32 %v2182_v47, %v427_v34 }
 0x5e6   :  { %v2184_v50 = vpop.eup %2183 }
 0x5e7   :  { %v445_v51 = vmul.f32 %v443_v49, %v39_v48  ;;  %v444_v52 = vmul.f32 %v2184_v50, %v428_v36  ;;  %v2151_v49 = vld [vmem:[%s2879_s6 + $0x4] ss:$8 sps:$4 sm:$0xff]   ;;  %v2149_v50 = vld [vmem:[%s2879_s6] ss:$8 sps:$4 sm:$0xff]  }
 0x5e9   :  { %v446_v54 = vmul.f32 %v444_v52, %v39_v48  ;;  %v447_v55 = vadd.f32 %v445_v51, %v40_v53  ;;  %v2152_v51 = vld [vmem:[%s2879_s6 + $0x10] ss:$8 sps:$4 sm:$0xff]   ;;  %v2154_v52 = vld [vmem:[%s2879_s6 + $0x14] ss:$8 sps:$4 sm:$0xff]  }
 0x5eb   :  { %v448_v56 = vadd.f32 %v446_v54, %v40_v53  ;;  %v2517_v53 = vld [vmem:[%s2880_s7 + $0x4] ss:$8 sps:$4 sm:$0xff]   ;;  %v2522_v54 = vld [vmem:[%s2880_s7] ss:$8 sps:$4 sm:$0xff]  }
 0x5ec   :  { %786 = vmatprep.subr.bf16.mxu0 %v2517_v53 }
 0x5ed   :  { %v449_v57 = vpack.c.bf16 %v448_v56, %v447_v55  ;;  %787 = vmatpush1.bf16.msra.mxu0 %v2522_v54 }
 0x5ef   :  { %2099 = vmatmul.mubr.msk.bf16.vlgmr.msra.gmra.mrb[12].mxu1 %vm108_vm0, %v449_v57 }
 0x5f0   :  { %2110 = vmatprep.mubr.msk.bf16.mxu1 %vm2283_vm1, %v2282_v8  ;;  %2103 = vmatpush3.bf16.msra.mxu1 %v2145_v58 }
 0x5f1   :  { %2104 = vmatprep.subr.bf16.mxu1 %v2282_v8 }
 0x5f4   :  { %2105 = vmatpush3.bf16.msra.mxu1 %v2146_v59 }
 0x5f5   :  { %2106 = vmatprep.subr.bf16.mxu1 %v2282_v8 }
 0x5f8   :  { %2107 = vmatpush3.bf16.msra.mxu1 %v2147_v60 }
 0x5f9   :  { %2108 = vmatprep.subr.bf16.mxu1 %v2282_v8 }
 0x5fc   :  { %2109 = vmatpush3.bf16.msra.mxu1 %v2148_v61 }
 0x5fd   :  { %666 = vmatprep.subr.bf16.mxu1 %v2151_v49 }
 0x6c2   :  { %v503_v63 = vpop.f32.mrb[12].mxu1 }
 0x6c3   :  { %v504_v0 = vadd.f32 %v503_v63, %v41_v62  ;;  %v2100_v1 = vpop.f32.mrb[13].mxu1 }
 0x6c4   :  { %v506_v3 = vpop.f32.mrb[14].mxu1 }
 0x6c5   :  { %v510_v4 = vmul.f32 %v504_v0, %v504_v0  ;;  %v507_v7 = vadd.f32 %v506_v3, %v41_v62  ;;  %v2101_v9 = vpop.f32.mrb[15].mxu1 }
 0x6c6   :  { %v44_v9 = vld [vmem:[%s2882_s9 + $0x7] ss:$0 sm:$0xff] }
 0x6c7   :  { %v512_v12 = vmul.f32 %v510_v4, %v504_v0  ;;  %v511_v14 = vmul.f32 %v507_v7, %v507_v7 }
 0x6c9   :  { %v514_v15 = vmul.f32 0.044715, %v512_v12  ;;  %v513_v8 = vmul.f32 %v511_v14, %v507_v7 }
 0x6cb   :  { %v516_v16 = vadd.f32 %v514_v15, %v504_v0  ;;  %v515_v17 = vmul.f32 0.044715, %v513_v8 }
 0x6cd   :  { %v518_v18 = vmul.f32 0.7978846, %v516_v16  ;;  %v517_v19 = vadd.f32 %v515_v17, %v507_v7 }
 0x6cf   :  { %2185 = vtanh.f32 %v518_v18  ;;  %v519_v20 = vmul.f32 0.7978846, %v517_v19 }
 0x6d1   :  { %2187 = vtanh.f32 %v519_v20 }
 0x6d9   :  { %v2186_v21 = vpop.eup %2185 }
 0x6da   :  { %v522_v22 = vadd.f32 1.0, %v2186_v21  ;;  %v45_v21 = vld [vmem:[%s2882_s9 + $0x18] ss:$0 sm:$0xff] }
 0x6db   :  { %v2188_v23 = vpop.eup %2187 }
 0x6dc   :  { %v524_v24 = vmul.f32 0.5, %v522_v22  ;;  %v523_v25 = vadd.f32 1.0, %v2188_v23  ;;  %v46_v22 = vld [vmem:[%s2882_s9 + $0x19] ss:$0 sm:$0xff] }
 0x6de   :  { %v525_v26 = vmul.f32 0.5, %v523_v25  ;;  %v526_v27 = vmul.f32 %v524_v24, %v504_v0  ;;  %v43_v0 = vld [vmem:[%s2882_s9 + $0x6] ss:$0 sm:$0xff] }
 0x6e0   :  { %v527_v28 = vmul.f32 %v525_v26, %v507_v7 }
 0x6e2   :  { %v528_v29 = vpack.c.bf16 %v527_v28, %v526_v27 }
 0x6e4   :  { %2111 = vmatmul.mubr.msk.bf16.vlgmr.msra.gmra.mrb[16].mxu1 %vm561_vm3, %v528_v29 }
 0x6e5   :  { %698 = vmatprep.mubr.bf16.mxu1 %v2281_v2  ;;  %667 = vmatpush1.bf16.msra.mxu1 %v2149_v50 }
 0x6e6   :  { %668 = vmatprep.subr.bf16.mxu1 %v2154_v52 }
 0x6e9   :  { %669 = vmatpush1.bf16.msra.mxu1 %v2152_v51 }
 0x6ea   :  { %860 = vmatprep.subr.bf16.mxu1 %v2517_v53 }
 0x7b7   :  { %v599_v31 = vpop.f32.mrb[16].mxu1 }
 0x7b8   :  { %v600_v32 = vadd.f32 %v599_v31, %v42_v30  ;;  %v2112_v33 = vpop.f32.mrb[17].mxu1 }
 0x7b9   :  { %v602_v34 = vpop.f32.mrb[18].mxu1 }
 0x7ba   :  { %v603_v35 = vadd.f32 %v602_v34, %v42_v30  ;;  %v2113_v36 = vpop.f32.mrb[19].mxu1  ;;  %v606_v37 = vadd.f32 %v600_v32, %v447_v55  ;;  %v2530_v55 = vld [vmem:[%s2880_s7 + $0x14] ss:$8 sps:$4 sm:$0xff]  }
 0x7bb   :  { %788 = vmatprep.subr.bf16.mxu0 %v2530_v55 }
 0x7bc   :  { %v608_v38 = vsel %vm108_vm0, %v606_v37, 0.0  ;;  %v607_v39 = vadd.f32 %v603_v35, %v448_v56  ;;  %v2535_v56 = vld [vmem:[%s2880_s7 + $0x10] ss:$8 sps:$4 sm:$0xff]  }
 0x7bd   :  { %609 = vadd.xlane.f32.xlu0 %v608_v38  ;;  %789 = vmatpush1.bf16.msra.mxu0 %v2535_v56 }
 0x7be   :  { %v611_v5 = vsel %vm108_vm0, %v607_v39, 0.0  ;;  %941 = vmatprep.subr.bf16.mxu0 %v2517_v53 }
 0x7bf   :  { %612 = vadd.xlane.f32.xlu1 %v611_v5 }
 0x7c0   :  { %819 = vmatmul.mubr.bf16.vlgmr.msra.gmra.mrb[8].mxu0 %v2281_v2 }
 0x7c1   :  { %942 = vmatpush1.bf16.msra.mxu0 %v2522_v54  ;;  %973 = vmatprep.mubr.bf16.mxu0 %v2281_v2 }
 0x7c2   :  { %943 = vmatprep.subr.bf16.mxu0 %v2530_v55 }
 0x7c5   :  { %944 = vmatpush1.bf16.msra.mxu0 %v2535_v56 }
 0x7c6   :  { %1099 = vmatprep.subr.bf16.mxu0 %v2517_v53 }
 0x84a   :  { %v610_v6 = vpop.xlane.xlu0 %609 }
 0x84b   :  { %v614_v40 = vmul.f32 0.03125, %v610_v6 }
 0x84c   :  { %v613_v41 = vpop.xlane.xlu1 %612 }
 0x84d   :  { %v616_v42 = vsub.f32 %v606_v37, %v614_v40  ;;  %v615_v43 = vmul.f32 0.03125, %v613_v41 }
 0x84f   :  { %v617_v44 = vsub.f32 %v607_v39, %v615_v43  ;;  %v618_v45 = vmul.f32 %v616_v42, %v616_v42 }
 0x851   :  { %v620_v46 = vsel %vm108_vm0, %v618_v45, 0.0  ;;  %v619_v47 = vmul.f32 %v617_v44, %v617_v44 }
 0x852   :  { %621 = vadd.xlane.f32.xlu0 %v620_v46 }
 0x853   :  { %v623_v48 = vsel %vm108_vm0, %v619_v47, 0.0 }
 0x854   :  { %624 = vadd.xlane.f32.xlu1 %v623_v48 }
 0x893   :  { %v820_v16 = vpop.f32.mrb[8].mxu0 }
 0x894   :  { %v822_v17 = vpop.f32.mrb[9].mxu0 }
 0x895   :  { %v824_v18 = vpop.f32.mrb[10].mxu0  ;;  %v827_v20 = vsel %vm758_vm4, %v820_v16, %v822_v17 }
 0x896   :  { %v825_v19 = vpop.f32.mrb[11].mxu0 }
 0x8df   :  { %v622_v57 = vpop.xlane.xlu0 %621 }
 0x8e0   :  { %v626_v58 = vmul.f32 0.03125, %v622_v57 }
 0x8e1   :  { %v625_v59 = vpop.xlane.xlu1 %624 }
 0x8e2   :  { %v628_v60 = vadd.f32 1e-12, %v626_v58  ;;  %v627_v61 = vmul.f32 0.03125, %v625_v59 }
 0x8e4   :  { %2189 = vrsqrt.f32 %v628_v60  ;;  %v629_v62 = vadd.f32 1e-12, %v627_v61 }
 0x8e6   :  { %2191 = vrsqrt.f32 %v629_v62 }
 0x8ee   :  { %v2190_v63 = vpop.eup %2189 }
 0x8ef   :  { %v632_v1 = vmul.f32 %v2190_v63, %v616_v42 }
 0x8f0   :  { %v2192_v3 = vpop.eup %2191 }
 0x8f1   :  { %v634_v4 = vmul.f32 %v632_v1, %v43_v0  ;;  %v633_v7 = vmul.f32 %v2192_v3, %v617_v44 }
 0x8f3   :  { %v635_v12 = vmul.f32 %v633_v7, %v43_v0  ;;  %v636_v14 = vadd.f32 %v634_v4, %v44_v9 }
 0x8f5   :  { %v637_v15 = vadd.f32 %v635_v12, %v44_v9 }
 0x8f7   :  { %v638_v8 = vpack.c.bf16 %v637_v15, %v636_v14 }
 0x8f9   :  { %2000 = vmatmul.mubr.msk.bf16.vlgmr.msra.gmra.mrb[20].mxu1 %vm108_vm0, %v638_v8 }
 0x8fa   :  { %861 = vmatpush1.bf16.msra.mxu1 %v2522_v54  ;;  %892 = vmatprep.mubr.bf16.mxu1 %v2281_v2 }
 0x8fb   :  { %862 = vmatprep.subr.bf16.mxu1 %v2530_v55 }
 0x8fe   :  { %863 = vmatpush1.bf16.msra.mxu1 %v2535_v56 }
 0x8ff   :  { %1018 = vmatprep.subr.bf16.mxu1 %v2517_v53 }
 0x9cc   :  { %v700_v23 = vpop.f32.mrb[20].mxu1 }
 0x9cd   :  { %v709_v24 = vadd.f32 %v700_v23, %v45_v21  ;;  %v702_v25 = vpop.f32.mrb[21].mxu1 }
 0x9ce   :  { %v711_v26 = vadd.f32 %v702_v25, %v46_v22  ;;  %v704_v27 = vpop.f32.mrb[22].mxu1 }
 0x9cf   :  { %v721_v28 = vrot.slane %v709_v24, 4  ;;  %v710_v29 = vadd.f32 %v704_v27, %v45_v21  ;;  %v706_v30 = vpop.f32.mrb[23].mxu1  ;;  %v717_v31 = vrot.slane %v709_v24, 6  ;;  %v723_v32 = vrot.slane %v709_v24, 2 }
 0x9d0   :  { %v728_v33 = vrot.slane %v711_v26, 4  ;;  %v712_v34 = vadd.f32 %v706_v30, %v46_v22  ;;  %v733_v38 = vrot.slane %v711_v26, 6  ;;  %v739_v40 = vrot.slane %v711_v26, 2 }
 0x9d1   :  { %v731_v35 = vrot.slane %v710_v29, 6  ;;  %v735_v36 = vrot.slane %v710_v29, 4  ;;  %v737_v37 = vrot.slane %v710_v29, 2 }
 0x9d2   :  { %v714_v39 = vrot.slane %v712_v34, 4  ;;  %v725_v5 = vrot.slane %v712_v34, 2  ;;  %v747_v6 = vsel %vm741_vm5, %v721_v28, %v712_v34  ;;  %v719_v41 = vrot.slane %v712_v34, 6 }
 0x9d3   :  { %v748_v42 = vsel %vm743_vm6, %v747_v6, %v723_v32  ;;  %v750_v43 = vsel %vm741_vm5, %v710_v29, %v728_v33  ;;  %v753_v44 = vsel %vm741_vm5, %v735_v36, %v711_v26  ;;  %v2286_v34 = vmov 1966171168  }
 0x9d4   :  { %v742_v45 = vsel %vm741_vm5, %v709_v24, %v714_v39  ;;  %v2573_v46 = vsel %vm745_vm7, %v748_v42, %v725_v5  ;;  %v751_v47 = vsel %vm743_vm6, %v750_v43, %v731_v35  ;;  %v754_v48 = vsel %vm743_vm6, %v753_v44, %v737_v37 }
 0x9d5   :  { %v744_v49 = vsel %vm743_vm6, %v742_v45, %v717_v31  ;;  %v2579_v50 = vsel %vm745_vm7, %v751_v47, %v733_v38  ;;  %v2582_v51 = vsel %vm745_vm7, %v754_v48, %v739_v40  ;;  %v1409_v35 = vunpack.c.l.s4 %v2286_v34 }
 0x9d6   :  { %v746_v52 = vsel %vm745_vm7, %v744_v49, %v719_v41 }
 0x9d7   :  { %v828_v57 = vadd.f32 %v827_v20, %v746_v52  ;;  %v1410_v36 = vunpack.c.0.s8 %v1409_v35 }
 0x9d9   :  { %2193 = vtanh.f32 %v828_v57  ;;  %v2005_v59 = vmul.f32 -1.442695, %v828_v57  ;;  %v2601_v37 = vsub.s32 %v1410_v36, %v2377_v10 }
 0x9db   :  { %2195 = vpow2.f32 %v2005_v59 }
 0x9e3   :  { %v2194_v58 = vpop.eup %2193 }
 0x9e4   :  { %838 = vrot.lane.b32.xlu0 %v2194_v58, %s2284_s21 }
 0x9e5   :  { %v2196_v60 = vpop.eup %2195 }
 0x9e6   :  { %v832_v61 = vadd.f32 1.0, %v2196_v60 }
 0x9e8   :  { %2197 = vrcp.f32 %v832_v61 }
 0x9f2   :  { %v2198_v62 = vpop.eup %2197 }
 0x9f3   :  { %v836_v1 = vmul.f32 0.0, %v2198_v62 }
 0xa56   :  { %v839_v63 = vpop.permute.xlu0 %838 }
 0xa57   :  { %v841_v0 = vmul.f32 %v2198_v62, %v839_v63 }
 0xa59   :  { %843 = vrot.lane.b32.xlu1 %v841_v0, %s2285_s22 }
 0xacb   :  { %v844_v3 = vpop.permute.xlu1 %843 }
 0xacc   :  { %v846_v4 = vadd.f32 %v844_v3, %v836_v1 }
 0xace   :  { %2199 = vtanh.f32 %v846_v4  ;;  %v914_v29 = vrot.slane %v846_v4, 4 }
 0xad8   :  { %v2200_v7 = vpop.eup %2199 }
 0xad9   :  { %849 = vrot.lane.b32.xlu1 %v2200_v7, %s2284_s21 }
 0xb4b   :  { %v850_v9 = vpop.permute.xlu1 %849 }
 0xb4c   :  { %v852_v12 = vmul.f32 %v2198_v62, %v850_v9 }
 0xb4e   :  { %v853_v14 = vpack.c.bf16 %v852_v12, %v852_v12  ;;  %v1414_v5 = vrot.slane %v852_v12, %v2601_v37 }
 0xb50   :  { %855 = vrot.lane.b32.xlu1 %v853_v14, %s2285_s22  ;;  %v1415_v43 = vcombine.high %v1414_v5, %v1414_v5  ;;  %v2610_v47 = vrot.slane %v1414_v5, %v2601_v37 }
 0xbc2   :  { %v856_v15 = vpop.permute.xlu1 %855 }
 0xbc3   :  { %2006 = vmatmul.mubr.msk.bf16.vlgmr.msra.gmra.mrb[24].mxu1 %vm108_vm0, %v856_v15 }
 0xbc4   :  { %1019 = vmatpush1.bf16.msra.mxu1 %v2522_v54  ;;  %1050 = vmatprep.mubr.bf16.mxu1 %v2281_v2 }
 0xbc5   :  { %1020 = vmatprep.subr.bf16.mxu1 %v2530_v55 }
 0xbc8   :  { %1021 = vmatpush1.bf16.msra.mxu1 %v2535_v56 }
 0xbc9   :  { %1176 = vmatprep.subr.bf16.mxu1 %v2517_v53 }
 0xc96   :  { %v894_v8 = vpop.f32.mrb[24].mxu1 }
 0xc97   :  { %v896_v16 = vpop.f32.mrb[25].mxu1 }
 0xc98   :  { %v901_v17 = vsel %vm758_vm4, %v894_v8, %v896_v16  ;;  %v898_v18 = vpop.f32.mrb[26].mxu1 }
 0xc99   :  { %v903_v19 = vrot.slane %v901_v17, 4  ;;  %v899_v20 = vpop.f32.mrb[27].mxu1 }
 0xc9b   :  { %v905_v21 = vadd.f32 %v903_v19, %v746_v52  ;;  %v2618_v52 = vrot.slane %v1415_v43, %v2601_v37 }
 0xc9d   :  { %2201 = vtanh.f32 %v905_v21  ;;  %v2007_v23 = vmul.f32 -1.442695, %v905_v21 }
 0xc9f   :  { %2203 = vpow2.f32 %v2007_v23 }
 0xca7   :  { %v2202_v22 = vpop.eup %2201 }
 0xca8   :  { %918 = vrot.lane.b32.xlu0 %v2202_v22, %s2284_s21 }
 0xca9   :  { %v2204_v24 = vpop.eup %2203 }
 0xcaa   :  { %v909_v25 = vadd.f32 1.0, %v2204_v24 }
 0xcac   :  { %2205 = vrcp.f32 %v909_v25 }
 0xcb6   :  { %v2206_v26 = vpop.eup %2205 }
 0xcb7   :  { %v916_v30 = vmul.f32 %v2206_v26, %v914_v29 }
 0xd1a   :  { %v919_v27 = vpop.permute.xlu0 %918 }
 0xd1b   :  { %v921_v28 = vmul.f32 %v2206_v26, %v919_v27 }
 0xd1d   :  { %923 = vrot.lane.b32.xlu1 %v921_v28, %s2285_s22 }
 0xd8f   :  { %v924_v31 = vpop.permute.xlu1 %923 }
 0xd90   :  { %v926_v32 = vadd.f32 %v924_v31, %v916_v30 }
 0xd92   :  { %2207 = vtanh.f32 %v926_v32  ;;  %v992_v16 = vrot.slane %v926_v32, 4 }
 0xd9c   :  { %v2208_v33 = vpop.eup %2207 }
 0xd9d   :  { %929 = vrot.lane.b32.xlu0 %v2208_v33, %s2284_s21 }
 0xe0f   :  { %v930_v38 = vpop.permute.xlu0 %929 }
 0xe10   :  { %v932_v39 = vmul.f32 %v2206_v26, %v930_v38 }
 0xe12   :  { %v933_v6 = vpack.c.bf16 %v932_v39, %v932_v39  ;;  %v1433_v40 = vcombine.high %v932_v39, %v932_v39 }
 0xe14   :  { %v935_v41 = vrot.slane %v933_v6, 2  ;;  %v1440_v42 = vrot.slane %v1433_v40, %v2601_v37 }
 0xe16   :  { %v1441_v44 = vcombine.high %v1440_v42, %v1440_v42  ;;  %v2606_v45 = vrot.slane %v1440_v42, %v2601_v37  ;;  %936 = vrot.lane.b32.xlu1 %v935_v41, %s2285_s22 }
 0xe18   :  { %v2613_v48 = vrot.slane %v1441_v44, %v2601_v37  ;;  %v1600_v49 = vrot.slane %v2606_v45, %v2380_v11 }
 0xe1a   :  { %v1604_v57 = vrot.slane %v2613_v48, %v2380_v11  ;;  %v1668_v58 = vsel %vm1667_vm8, %v2610_v47, %v1600_v49 }
 0xe1c   :  { %v1669_v59 = vsel %vm1667_vm8, %v2618_v52, %v1604_v57 }
 0xe88   :  { %v937_v60 = vpop.permute.xlu1 %936 }
 0xe89   :  { %2008 = vmatmul.mubr.msk.bf16.vlgmr.msra.gmra.mrb[12].mxu0 %vm108_vm0, %v937_v60 }
 0xe8a   :  { %1100 = vmatpush1.bf16.msra.mxu0 %v2522_v54  ;;  %1131 = vmatprep.mubr.bf16.mxu0 %v2281_v2 }
 0xe8b   :  { %1101 = vmatprep.subr.bf16.mxu0 %v2530_v55 }
 0xe8e   :  { %1102 = vmatpush1.bf16.msra.mxu0 %v2535_v56 }
 0xe8f   :  { %1257 = vmatprep.subr.bf16.mxu0 %v2517_v53 }
 0xf5c   :  { %v975_v61 = vpop.f32.mrb[12].mxu0 }
 0xf5d   :  { %v977_v62 = vpop.f32.mrb[13].mxu0 }
 0xf5e   :  { %v982_v63 = vsel %vm758_vm4, %v975_v61, %v977_v62  ;;  %v979_v0 = vpop.f32.mrb[14].mxu0 }
 0xf5f   :  { %v983_v1 = vadd.f32 %v982_v63, %v2573_v46  ;;  %v980_v3 = vpop.f32.mrb[15].mxu0 }
 0xf61   :  { %2209 = vtanh.f32 %v983_v1  ;;  %v2009_v7 = vmul.f32 -1.442695, %v983_v1 }
 0xf63   :  { %2211 = vpow2.f32 %v2009_v7 }
 0xf6b   :  { %v2210_v4 = vpop.eup %2209 }
 0xf6c   :  { %996 = vrot.lane.b32.xlu0 %v2210_v4, %s2284_s21 }
 0xf6d   :  { %v2212_v9 = vpop.eup %2211 }
 0xf6e   :  { %v987_v12 = vadd.f32 1.0, %v2212_v9 }
 0xf70   :  { %2213 = vrcp.f32 %v987_v12 }
 0xf7a   :  { %v2214_v14 = vpop.eup %2213 }
 0xf7b   :  { %v994_v17 = vmul.f32 %v2214_v14, %v992_v16 }
 0xfde   :  { %v997_v15 = vpop.permute.xlu0 %996 }
 0xfdf   :  { %v999_v8 = vmul.f32 %v2214_v14, %v997_v15 }
 0xfe1   :  { %1001 = vrot.lane.b32.xlu1 %v999_v8, %s2285_s22 }
0x1053   :  { %v1002_v18 = vpop.permute.xlu1 %1001 }
0x1054   :  { %v1004_v19 = vadd.f32 %v1002_v18, %v994_v17 }
0x1056   :  { %2215 = vtanh.f32 %v1004_v19  ;;  %v1072_v49 = vrot.slane %v1004_v19, 4 }
0x1060   :  { %v2216_v20 = vpop.eup %2215 }
0x1061   :  { %1007 = vrot.lane.b32.xlu0 %v2216_v20, %s2284_s21 }
0x10d3   :  { %v1008_v21 = vpop.permute.xlu0 %1007 }
0x10d4   :  { %v1010_v22 = vmul.f32 %v2214_v14, %v1008_v21 }
0x10d6   :  { %v1011_v23 = vpack.c.bf16 %v1010_v22, %v1010_v22  ;;  %v1463_v24 = vrot.slane %v1010_v22, %v2601_v37 }
0x10d8   :  { %v1464_v25 = vcombine.high %v1463_v24, %v1463_v24  ;;  %v2640_v26 = vrot.slane %v1463_v24, %v2601_v37  ;;  %1013 = vrot.lane.b32.xlu1 %v1011_v23, %s2285_s22 }
0x10da   :  { %v2644_v27 = vrot.slane %v1464_v25, %v2601_v37  ;;  %v1610_v28 = vrot.slane %v2640_v26, %v2380_v11 }
0x10dc   :  { %v1614_v29 = vrot.slane %v2644_v27, %v2380_v11  ;;  %v1670_v30 = vsel %vm741_vm5, %v1668_v58, %v1610_v28 }
0x10de   :  { %v1671_v31 = vsel %vm741_vm5, %v1669_v59, %v1614_v29 }
0x114a   :  { %v1014_v32 = vpop.permute.xlu1 %1013 }
0x114b   :  { %2010 = vmatmul.mubr.msk.bf16.vlgmr.msra.gmra.mrb[28].mxu1 %vm108_vm0, %v1014_v32 }
0x114c   :  { %1177 = vmatpush1.bf16.msra.mxu1 %v2522_v54  ;;  %1208 = vmatprep.mubr.bf16.mxu1 %v2281_v2 }
0x114d   :  { %1178 = vmatprep.subr.bf16.mxu1 %v2530_v55 }
0x1150   :  { %1179 = vmatpush1.bf16.msra.mxu1 %v2535_v56 }
0x1151   :  { %1334 = vmatprep.subr.bf16.mxu1 %v2517_v53 }
0x121e   :  { %v1052_v33 = vpop.f32.mrb[28].mxu1 }
0x121f   :  { %v1054_v34 = vpop.f32.mrb[29].mxu1 }
0x1220   :  { %v1059_v35 = vsel %vm758_vm4, %v1052_v33, %v1054_v34  ;;  %v1056_v36 = vpop.f32.mrb[30].mxu1 }
0x1221   :  { %v1061_v38 = vrot.slane %v1059_v35, 4  ;;  %v1057_v39 = vpop.f32.mrb[31].mxu1 }
0x1223   :  { %v1063_v5 = vadd.f32 %v1061_v38, %v2573_v46 }
0x1225   :  { %2217 = vtanh.f32 %v1063_v5  ;;  %v2011_v40 = vmul.f32 -1.442695, %v1063_v5 }
0x1227   :  { %2219 = vpow2.f32 %v2011_v40 }
0x122f   :  { %v2218_v6 = vpop.eup %2217 }
0x1230   :  { %1076 = vrot.lane.b32.xlu0 %v2218_v6, %s2284_s21 }
0x1231   :  { %v2220_v41 = vpop.eup %2219 }
0x1232   :  { %v1067_v42 = vadd.f32 1.0, %v2220_v41 }
0x1234   :  { %2221 = vrcp.f32 %v1067_v42 }
0x123e   :  { %v2222_v53 = vpop.eup %2221 }
0x123f   :  { %v1074_v57 = vmul.f32 %v2222_v53, %v1072_v49 }
0x12a2   :  { %v1077_v43 = vpop.permute.xlu0 %1076 }
0x12a3   :  { %v1079_v44 = vmul.f32 %v2222_v53, %v1077_v43 }
0x12a5   :  { %1081 = vrot.lane.b32.xlu1 %v1079_v44, %s2285_s22 }
0x1317   :  { %v1082_v58 = vpop.permute.xlu1 %1081 }
0x1318   :  { %v1084_v59 = vadd.f32 %v1082_v58, %v1074_v57 }
0x131a   :  { %2223 = vtanh.f32 %v1084_v59 }
0x1324   :  { %v2224_v46 = vpop.eup %2223 }
0x1325   :  { %1087 = vrot.lane.b32.xlu0 %v2224_v46, %s2284_s21 }
0x1397   :  { %v1088_v60 = vpop.permute.xlu0 %1087 }
0x1398   :  { %v1090_v61 = vmul.f32 %v2222_v53, %v1088_v60 }
0x139a   :  { %v1091_v62 = vpack.c.bf16 %v1090_v61, %v1090_v61  ;;  %v1480_v63 = vcombine.high %v1090_v61, %v1090_v61 }
0x139c   :  { %v1093_v0 = vrot.slane %v1091_v62, 2  ;;  %v1487_v1 = vrot.slane %v1480_v63, %v2601_v37 }
0x139e   :  { %v1488_v3 = vcombine.high %v1487_v1, %v1487_v1  ;;  %v2666_v4 = vrot.slane %v1487_v1, %v2601_v37  ;;  %1094 = vrot.lane.b32.xlu1 %v1093_v0, %s2285_s22 }
0x13a0   :  { %v2670_v7 = vrot.slane %v1488_v3, %v2601_v37  ;;  %v1620_v9 = vrot.slane %v2666_v4, %v2380_v11 }
0x13a2   :  { %v1624_v12 = vrot.slane %v2670_v7, %v2380_v11  ;;  %v1673_v14 = vsel %vm1672_vm9, %v1670_v30, %v1620_v9 }
0x13a4   :  { %v1674_v15 = vsel %vm1672_vm9, %v1671_v31, %v1624_v12  ;;  %v1150_v31 = vrot.slane %v1084_v59, 4 }
0x1410   :  { %v1095_v8 = vpop.permute.xlu1 %1094 }
0x1411   :  { %2012 = vmatmul.mubr.msk.bf16.vlgmr.msra.gmra.mrb[16].mxu0 %vm108_vm0, %v1095_v8 }
0x1412   :  { %1258 = vmatpush1.bf16.msra.mxu0 %v2522_v54  ;;  %1289 = vmatprep.mubr.bf16.mxu0 %v2281_v2 }
0x1413   :  { %1259 = vmatprep.subr.bf16.mxu0 %v2530_v55 }
0x1416   :  { %1260 = vmatpush1.bf16.msra.mxu0 %v2535_v56 }
0x14e4   :  { %v1133_v16 = vpop.f32.mrb[16].mxu0 }
0x14e5   :  { %v1135_v17 = vpop.f32.mrb[17].mxu0 }
0x14e6   :  { %v1140_v18 = vsel %vm758_vm4, %v1133_v16, %v1135_v17  ;;  %v1137_v19 = vpop.f32.mrb[18].mxu0 }
0x14e7   :  { %v1141_v20 = vadd.f32 %v1140_v18, %v2579_v50  ;;  %v1138_v21 = vpop.f32.mrb[19].mxu0 }
0x14e9   :  { %2225 = vtanh.f32 %v1141_v20  ;;  %v2013_v23 = vmul.f32 -1.442695, %v1141_v20 }
0x14eb   :  { %2227 = vpow2.f32 %v2013_v23 }
0x14f3   :  { %v2226_v22 = vpop.eup %2225 }
0x14f4   :  { %1154 = vrot.lane.b32.xlu0 %v2226_v22, %s2284_s21 }
0x14f5   :  { %v2228_v24 = vpop.eup %2227 }
0x14f6   :  { %v1145_v25 = vadd.f32 1.0, %v2228_v24 }
0x14f8   :  { %2229 = vrcp.f32 %v1145_v25 }
0x1502   :  { %v2230_v28 = vpop.eup %2229 }
0x1503   :  { %v1152_v32 = vmul.f32 %v2230_v28, %v1150_v31 }
0x1566   :  { %v1155_v29 = vpop.permute.xlu0 %1154 }
0x1567   :  { %v1157_v30 = vmul.f32 %v2230_v28, %v1155_v29 }
0x1569   :  { %1159 = vrot.lane.b32.xlu1 %v1157_v30, %s2285_s22 }
0x15db   :  { %v1160_v33 = vpop.permute.xlu1 %1159 }
0x15dc   :  { %v1162_v34 = vadd.f32 %v1160_v33, %v1152_v32 }
0x15de   :  { %2231 = vtanh.f32 %v1162_v34  ;;  %v1230_v9 = vrot.slane %v1162_v34, 4 }
0x15e8   :  { %v2232_v35 = vpop.eup %2231 }
0x15e9   :  { %1165 = vrot.lane.b32.xlu0 %v2232_v35, %s2284_s21 }
0x165b   :  { %v1166_v36 = vpop.permute.xlu0 %1165 }
0x165c   :  { %v1168_v38 = vmul.f32 %v2230_v28, %v1166_v36 }
0x165e   :  { %v1169_v39 = vpack.c.bf16 %v1168_v38, %v1168_v38  ;;  %v1510_v5 = vrot.slane %v1168_v38, %v2601_v37 }
0x1660   :  { %v1511_v6 = vcombine.high %v1510_v5, %v1510_v5  ;;  %v2691_v40 = vrot.slane %v1510_v5, %v2601_v37  ;;  %1171 = vrot.lane.b32.xlu1 %v1169_v39, %s2285_s22 }
0x1662   :  { %v2695_v41 = vrot.slane %v1511_v6, %v2601_v37  ;;  %v1630_v42 = vrot.slane %v2691_v40, %v2380_v11 }
0x1664   :  { %v1634_v53 = vrot.slane %v2695_v41, %v2380_v11  ;;  %v1675_v43 = vsel %vm743_vm6, %v1673_v14, %v1630_v42 }
0x1666   :  { %v1676_v44 = vsel %vm743_vm6, %v1674_v15, %v1634_v53 }
0x16d2   :  { %v1172_v49 = vpop.permute.xlu1 %1171 }
0x16d3   :  { %2014 = vmatmul.mubr.msk.bf16.vlgmr.msra.gmra.mrb[32].mxu1 %vm108_vm0, %v1172_v49 }
0x16d4   :  { %1335 = vmatpush1.bf16.msra.mxu1 %v2522_v54  ;;  %1366 = vmatprep.mubr.bf16.mxu1 %v2281_v2 }
0x16d5   :  { %1336 = vmatprep.subr.bf16.mxu1 %v2530_v55 }
0x16d8   :  { %1337 = vmatpush1.bf16.msra.mxu1 %v2535_v56 }
0x17a6   :  { %v1210_v57 = vpop.f32.mrb[32].mxu1 }
0x17a7   :  { %v1212_v58 = vpop.f32.mrb[33].mxu1 }
0x17a8   :  { %v1217_v59 = vsel %vm758_vm4, %v1210_v57, %v1212_v58  ;;  %v1214_v46 = vpop.f32.mrb[34].mxu1 }
0x17a9   :  { %v1219_v60 = vrot.slane %v1217_v59, 4  ;;  %v1215_v61 = vpop.f32.mrb[35].mxu1 }
0x17ab   :  { %v1221_v62 = vadd.f32 %v1219_v60, %v2579_v50 }
0x17ad   :  { %2233 = vtanh.f32 %v1221_v62  ;;  %v2015_v54 = vmul.f32 -1.442695, %v1221_v62 }
0x17af   :  { %2235 = vpow2.f32 %v2015_v54 }
0x17b7   :  { %v2234_v63 = vpop.eup %2233 }
0x17b8   :  { %1234 = vrot.lane.b32.xlu0 %v2234_v63, %s2284_s21 }
0x17b9   :  { %v2236_v0 = vpop.eup %2235 }
0x17ba   :  { %v1225_v55 = vadd.f32 1.0, %v2236_v0 }
0x17bc   :  { %2237 = vrcp.f32 %v1225_v55 }
0x17c6   :  { %v2238_v56 = vpop.eup %2237 }
0x17c7   :  { %v1232_v12 = vmul.f32 %v2238_v56, %v1230_v9 }
0x182a   :  { %v1235_v1 = vpop.permute.xlu0 %1234 }
0x182b   :  { %v1237_v3 = vmul.f32 %v2238_v56, %v1235_v1 }
0x182d   :  { %1239 = vrot.lane.b32.xlu1 %v1237_v3, %s2285_s22 }
0x189f   :  { %v1240_v14 = vpop.permute.xlu1 %1239 }
0x18a0   :  { %v1242_v15 = vadd.f32 %v1240_v14, %v1232_v12 }
0x18a2   :  { %2239 = vtanh.f32 %v1242_v15 }
0x18ac   :  { %v2240_v50 = vpop.eup %2239 }
0x18ad   :  { %1245 = vrot.lane.b32.xlu0 %v2240_v50, %s2284_s21 }
0x191f   :  { %v1246_v8 = vpop.permute.xlu0 %1245 }
0x1920   :  { %v1248_v16 = vmul.f32 %v2238_v56, %v1246_v8 }
0x1922   :  { %v1249_v17 = vpack.c.bf16 %v1248_v16, %v1248_v16  ;;  %v1527_v18 = vcombine.high %v1248_v16, %v1248_v16 }
0x1924   :  { %v1251_v19 = vrot.slane %v1249_v17, 2  ;;  %v1534_v20 = vrot.slane %v1527_v18, %v2601_v37 }
0x1926   :  { %v1535_v21 = vcombine.high %v1534_v20, %v1534_v20  ;;  %v2716_v22 = vrot.slane %v1534_v20, %v2601_v37  ;;  %1252 = vrot.lane.b32.xlu1 %v1251_v19, %s2285_s22 }
0x1928   :  { %v2720_v23 = vrot.slane %v1535_v21, %v2601_v37  ;;  %v1640_v24 = vrot.slane %v2716_v22, %v2380_v11 }
0x192a   :  { %v1644_v25 = vrot.slane %v2720_v23, %v2380_v11  ;;  %v1678_v28 = vsel %vm1677_vm10, %v1675_v43, %v1640_v24 }
0x192c   :  { %v1679_v29 = vsel %vm1677_vm10, %v1676_v44, %v1644_v25  ;;  %v1308_v44 = vrot.slane %v1242_v15, 4 }
0x1998   :  { %v1253_v30 = vpop.permute.xlu1 %1252 }
0x1999   :  { %2016 = vmatmul.mubr.msk.bf16.vlgmr.msra.gmra.mrb[20].mxu0 %vm108_vm0, %v1253_v30 }
0x199a   :  { %1855 = vmatprep.mubr.bf16.mxu0 %v2281_v2 }
0x1a6c   :  { %v1291_v31 = vpop.f32.mrb[20].mxu0 }
0x1a6d   :  { %v1293_v32 = vpop.f32.mrb[21].mxu0 }
0x1a6e   :  { %v1298_v33 = vsel %vm758_vm4, %v1291_v31, %v1293_v32  ;;  %v1295_v34 = vpop.f32.mrb[22].mxu0 }
0x1a6f   :  { %v1299_v35 = vadd.f32 %v1298_v33, %v2582_v51  ;;  %v1296_v36 = vpop.f32.mrb[23].mxu0  ;;  %v2161_v33 = vld [vmem:[%s2881_s8 + $0x20] ss:$8 sps:$4 sm:$0xff]   ;;  %v2163_v34 = vld [vmem:[%s2881_s8 + $0x24] ss:$8 sps:$4 sm:$0xff]  }
0x1a70   :  { %1823 = vmatprep.subr.bf16.mxu0 %v2163_v34 }
0x1a71   :  { %2241 = vtanh.f32 %v1299_v35  ;;  %v2017_v39 = vmul.f32 -1.442695, %v1299_v35  ;;  %1824 = vmatpush1.bf16.msra.mxu0 %v2161_v33 }
0x1a73   :  { %2243 = vpow2.f32 %v2017_v39  ;;  %v2164_v39 = vld [vmem:[%s2881_s8 + $0x30] ss:$8 sps:$4 sm:$0xff]  }
0x1a7b   :  { %v2242_v38 = vpop.eup %2241 }
0x1a7c   :  { %1312 = vrot.lane.b32.xlu0 %v2242_v38, %s2284_s21  ;;  %v1699_v38 = vcombine.high %v2606_v45, %v2606_v45  ;;  %v1701_v45 = vcombine.high %v2610_v47, %v2610_v47  ;;  %v1691_v47 = vcombine.high %v2716_v22, %v2716_v22  ;;  %v1692_v22 = vcombine.high %v2720_v23, %v2720_v23 }
0x1a7d   :  { %v2244_v5 = vpop.eup %2243 }
0x1a7e   :  { %v1303_v6 = vadd.f32 1.0, %v2244_v5  ;;  %v2166_v5 = vld [vmem:[%s2881_s8 + $0x34] ss:$8 sps:$4 sm:$0xff]  }
0x1a7f   :  { %1825 = vmatprep.subr.bf16.mxu0 %v2166_v5 }
0x1a80   :  { %2245 = vrcp.f32 %v1303_v6  ;;  %1826 = vmatpush1.bf16.msra.mxu0 %v2164_v39  ;;  %v2170_v39 = vld [vmem:[%s2881_s8 + $0x10] ss:$8 sps:$4 sm:$0xff]  }
0x1a8a   :  { %v2246_v42 = vpop.eup %2245 }
0x1a8b   :  { %v1310_v49 = vmul.f32 %v2246_v42, %v1308_v44 }
0x1aee   :  { %v1313_v53 = vpop.permute.xlu0 %1312 }
0x1aef   :  { %v1315_v43 = vmul.f32 %v2246_v42, %v1313_v53  ;;  %v1697_v53 = vcombine.high %v2640_v26, %v2640_v26  ;;  %v1693_v26 = vcombine.high %v2691_v40, %v2691_v40  ;;  %v1694_v40 = vcombine.high %v2695_v41, %v2695_v41 }
0x1af1   :  { %1317 = vrot.lane.b32.xlu1 %v1315_v43, %s2285_s22  ;;  %v1702_v43 = vcombine.high %v2618_v52, %v2618_v52  ;;  %v1698_v52 = vcombine.high %v2644_v27, %v2644_v27 }
0x1b63   :  { %v1318_v57 = vpop.permute.xlu1 %1317 }
0x1b64   :  { %v1320_v58 = vadd.f32 %v1318_v57, %v1310_v49  ;;  %v1700_v57 = vcombine.high %v2613_v48, %v2613_v48  ;;  %v1746_v48 = vrot.slane %v1697_v53, %v2380_v11 }
0x1b66   :  { %2247 = vtanh.f32 %v1320_v58 }
0x1b70   :  { %v2248_v59 = vpop.eup %2247 }
0x1b71   :  { %1323 = vrot.lane.b32.xlu0 %v2248_v59, %s2284_s21 }
0x1be3   :  { %v1324_v46 = vpop.permute.xlu0 %1323 }
0x1be4   :  { %v1326_v60 = vmul.f32 %v2246_v42, %v1324_v46  ;;  %v2169_v42 = vld [vmem:[%s2881_s8 + $0x4] ss:$8 sps:$4 sm:$0xff]  }
0x1be5   :  { %1892 = vmatprep.subr.bf16.mxu0 %v2169_v42 }
0x1be6   :  { %v1327_v61 = vpack.c.bf16 %v1326_v60, %v1326_v60  ;;  %v1557_v62 = vrot.slane %v1326_v60, %v2601_v37 }
0x1be8   :  { %v1558_v63 = vcombine.high %v1557_v62, %v1557_v62  ;;  %v2738_v54 = vrot.slane %v1557_v62, %v2601_v37  ;;  %1329 = vrot.lane.b32.xlu1 %v1327_v61, %s2285_s22  ;;  %v1695_v61 = vcombine.high %v2666_v4, %v2666_v4  ;;  %v1716_v4 = vrot.slane %v1691_v47, %v2380_v11 }
0x1bea   :  { %v2742_v0 = vrot.slane %v1558_v63, %v2601_v37  ;;  %v1650_v55 = vrot.slane %v2738_v54, %v2380_v11  ;;  %v1689_v44 = vcombine.high %v2738_v54, %v2738_v54 }
0x1bec   :  { %v1654_v56 = vrot.slane %v2742_v0, %v2380_v11  ;;  %v2749_v1 = vsel %vm745_vm7, %v1678_v28, %v1650_v55  ;;  %v1690_v59 = vcombine.high %v2742_v0, %v2742_v0  ;;  %v1706_v62 = vrot.slane %v1689_v44, %v2380_v11 }
0x1bed   :  { %v1696_v0 = vcombine.high %v2670_v7, %v2670_v7  ;;  %v1726_v55 = vrot.slane %v1693_v26, %v2380_v11 }
0x1bee   :  { %v2752_v3 = vsel %vm745_vm7, %v1679_v29, %v1654_v56  ;;  %v1388_v29 = vrot.slane %v1320_v58, 4  ;;  %v1756_v58 = vrot.slane %v1699_v38, %v2380_v11  ;;  %v1710_v41 = vrot.slane %v1690_v59, %v2380_v11 }
0x1c5a   :  { %v1330_v9 = vpop.permute.xlu1 %1329 }
0x1c5b   :  { %2018 = vmatmul.mubr.msk.bf16.vlgmr.msra.gmra.mrb[36].mxu1 %vm108_vm0, %v1330_v9 }
0x1d2e   :  { %v1368_v12 = vpop.f32.mrb[36].mxu1 }
0x1d2f   :  { %v1370_v14 = vpop.f32.mrb[37].mxu1 }
0x1d30   :  { %v1375_v15 = vsel %vm758_vm4, %v1368_v12, %v1370_v14  ;;  %v1372_v50 = vpop.f32.mrb[38].mxu1  ;;  %v1730_v12 = vrot.slane %v1694_v40, %v2380_v11  ;;  %v1720_v14 = vrot.slane %v1692_v22, %v2380_v11 }
0x1d31   :  { %v1377_v8 = vrot.slane %v1375_v15, 4  ;;  %v1373_v16 = vpop.f32.mrb[39].mxu1 }
0x1d33   :  { %v1379_v17 = vadd.f32 %v1377_v8, %v2582_v51 }
0x1d35   :  { %2249 = vtanh.f32 %v1379_v17  ;;  %v2019_v19 = vmul.f32 -1.442695, %v1379_v17  ;;  %v1740_v17 = vrot.slane %v1696_v0, %v2380_v11 }
0x1d37   :  { %2251 = vpow2.f32 %v2019_v19 }
0x1d3f   :  { %v2250_v18 = vpop.eup %2249 }
0x1d40   :  { %1392 = vrot.lane.b32.xlu0 %v2250_v18, %s2284_s21 }
0x1d41   :  { %v2252_v20 = vpop.eup %2251 }
0x1d42   :  { %v1383_v21 = vadd.f32 1.0, %v2252_v20 }
0x1d44   :  { %2253 = vrcp.f32 %v1383_v21  ;;  %v1766_v21 = vrot.slane %v1701_v45, %v2380_v11 }
0x1d4e   :  { %v2254_v24 = vpop.eup %2253 }
0x1d4f   :  { %v1390_v30 = vmul.f32 %v2254_v24, %v1388_v29 }
0x1db2   :  { %v1393_v25 = vpop.permute.xlu0 %1392 }
0x1db3   :  { %v1395_v28 = vmul.f32 %v2254_v24, %v1393_v25 }
0x1db5   :  { %1397 = vrot.lane.b32.xlu1 %v1395_v28, %s2285_s22 }
0x1e27   :  { %v1398_v31 = vpop.permute.xlu1 %1397 }
0x1e28   :  { %v1400_v32 = vadd.f32 %v1398_v31, %v1390_v30  ;;  %v1770_v30 = vrot.slane %v1702_v43, %v2380_v11 }
0x1e2a   :  { %2255 = vtanh.f32 %v1400_v32 }
0x1e34   :  { %v2256_v51 = vpop.eup %2255 }
0x1e35   :  { %1403 = vrot.lane.b32.xlu0 %v2256_v51, %s2284_s21 }
0x1ea7   :  { %v1404_v35 = vpop.permute.xlu0 %1403 }
0x1ea8   :  { %v1406_v36 = vmul.f32 %v2254_v24, %v1404_v35  ;;  %v1750_v24 = vrot.slane %v1698_v52, %v2380_v11  ;;  %v2167_v35 = vld [vmem:[%s2881_s8] ss:$8 sps:$4 sm:$0xff]  }
0x1eaa   :  { %v1574_v6 = vcombine.high %v1406_v36, %v1406_v36  ;;  %v2172_v36 = vld [vmem:[%s2881_s8 + $0x14] ss:$8 sps:$4 sm:$0xff]   ;;  %s2287_s8 = smov [#allocation2]  }
0x1eab   :  { %s1959_s7 = sshll.u32 %s2287_s8, 4  ;;  %s1960_s7 = int_to_ptr.vmem [resolvable:$true] %s1959_s7 }
0x1eac   :  { %v1581_v49 = vrot.slane %v1574_v6, %v2601_v37  ;;  %v1970_v6 = vld [vmem:[%s2882_s9 + $0x1a] ss:$8 sm:$0x3]  ;;  %s2257_s9 = scalar_lea.vmem %s1960_s7, 512  ;;  %p2262_p1 = scmp.lt.s32.totalorder %s1960_s7, %s1960_s7 }
0x1ead   :  { %v1939_v42 = vrot.slane %v1970_v6, %v2380_v11  ;;  %v1943_v53 = vrot.slane %v1970_v6, %v67_v13  ;;  %p2258_p0 = scmp.ne.s32.totalorder %s1960_s7, %s2257_s9  ;;  %p2263_p2 = scmp.lt.s32.totalorder %s2257_s9, %s2257_s9 }
0x1eae   :  { %v1582_v46 = vcombine.high %v1581_v49, %v1581_v49  ;;  %v1589_v60 = vrot.slane %v1581_v49, %v2601_v37 }
0x1eaf   :  { %p2264_p3 = por %p2263_p2, %p2262_p1 }
0x1eb0   :  { %v1596_v27 = vrot.slane %v1582_v46, %v2601_v37  ;;  %v1660_v63 = vrot.slane %v1589_v60, %v2380_v11  ;;  %v1685_v54 = vcombine.high %v1589_v60, %v1589_v60  ;;  %v1736_v37 = vrot.slane %v1695_v61, %v2380_v11 }
0x1eb1   :  { %p2265_p4 = pnand %p2264_p3, %p2258_p0 }
0x1eb2   :  { %v1664_v56 = vrot.slane %v1596_v27, %v2380_v11  ;;  %v1686_v23 = vcombine.high %v1596_v27, %v1596_v27  ;;  %v1773_v9 = vsel %vm1667_vm8, %v1685_v54, %v1706_v62  ;;  %v1683_v50 = vsel %vm1682_vm11, %v2749_v1, %v1660_v63 }
0x1eb3   :  { %v1775_v7 = vsel %vm741_vm5, %v1773_v9, %v1716_v4 }
0x1eb4   :  { %v1774_v15 = vsel %vm1667_vm8, %v1686_v23, %v1710_v41  ;;  %v1684_v8 = vsel %vm1682_vm11, %v2752_v3, %v1664_v56  ;;  %v1777_v16 = vsel %vm1672_vm9, %v1775_v7, %v1726_v55  ;;  %v1760_v3 = vrot.slane %v1700_v57, %v2380_v11 }
0x1eb5   :  { %v1776_v18 = vsel %vm741_vm5, %v1774_v15, %v1720_v14  ;;  %v1787_v19 = vpack.c.bf16 %v1684_v8, %v1683_v50  ;;  %v1779_v20 = vsel %vm743_vm6, %v1777_v16, %v1736_v37 }
0x1eb6   :  { %v1778_v25 = vsel %vm1672_vm9, %v1776_v18, %v1730_v12  ;;  %v1781_v1 = vsel %vm1677_vm10, %v1779_v20, %v1746_v48 }
0x1eb7   :  { %1867 = vrot.lane.b32.xlu0 %v1787_v19, %s2285_s22  ;;  %v1780_v28 = vsel %vm743_vm6, %v1778_v25, %v1740_v17  ;;  %v1783_v29 = vsel %vm745_vm7, %v1781_v1, %v1756_v58 }
0x1eb8   :  { %v1782_v31 = vsel %vm1677_vm10, %v1780_v28, %v1750_v24  ;;  %v1785_v32 = vsel %vm1682_vm11, %v1783_v29, %v1766_v21 }
0x1eb9   :  { %v1784_v51 = vsel %vm745_vm7, %v1782_v31, %v1760_v3 }
0x1eba   :  { %v1786_v33 = vsel %vm1682_vm11, %v1784_v51, %v1770_v30 }
0x1ebb   :  { %v1792_v34 = vpack.c.bf16 %v1786_v33, %v1785_v32 }
0x1ebd   :  { %1798 = vrot.lane.b32.xlu1 %v1792_v34, %s2285_s22 }
0x1f29   :  { %v1868_v5 = vpop.permute.xlu0 %1867 }
0x1f2f   :  { %v1799_v38 = vpop.permute.xlu1 %1798 }
0x1f30   :  { %2024 = vmatmul.mubr.msk.bf16.vlgmr.msra.gmra.mrb[24].mxu0 %vm108_vm0, %v1799_v38 }
0x1f31   :  { %1893 = vmatpush1.bf16.msra.mxu0 %v2167_v35  ;;  %1924 = vmatprep.mubr.bf16.mxu0 %v2281_v2 }
0x1f32   :  { %1894 = vmatprep.subr.bf16.mxu0 %v2172_v36 }
0x1f35   :  { %1895 = vmatpush1.bf16.msra.mxu0 %v2170_v39 }
0x1f3c   :  { %2029 = vmatmul.mubr.msk.bf16.vlgmr.msra.gmra.mrb[24].mxu0 %vm108_vm0, %v1868_v5 }
0x200f   :  { %v1926_v45 = vpop.f32.mrb[24].mxu0 }
0x2010   :  { %v1946_v43 = vadd.f32 %v1939_v42, %v1926_v45  ;;  %v1928_v44 = vpop.f32.mrb[25].mxu0 }
0x2011   :  { %v1947_v2 = vadd.f32 %v1943_v53, %v1928_v44  ;;  %v1930_v49 = vpop.f32.mrb[26].mxu0 }
0x2012   :  { %1950 = vst [vmem:[#allocation2] sm:$0xff] %v1946_v43  ;;  %v1948_v57 = vadd.f32 %v1939_v42, %v1930_v49  ;;  %v1932_v58 = vpop.f32.mrb[27].mxu0 }
0x2013   :  { %1951 = vst [vmem:[#allocation2 + $0x8] sm:$0xff] %v1947_v2  ;;  %v1949_v26 = vadd.f32 %v1943_v53, %v1932_v58 }
0x2014   :  { %1952 = vst [vmem:[#allocation2 + $0x10] sm:$0xff] %v1948_v57 }
0x2015   :  { %1953 = vst [vmem:[#allocation2 + $0x18] sm:$0xff] %v1949_v26 }
0x2016   :  { %2268 = shalt.err (!%p2265_p4)
}
0x2017   :  { %s2269_s16 = scalar_lea.hbm %s2883_s10, 512 }
0x2018   :  { %p2270_p5 = scmp.ne.s32.totalorder %s2883_s10, %s2269_s16  ;;  %p2273_p6 = scmp.lt.u32.totalorder %s2269_s16, %s2883_s10 }
0x201a   :  { %p2275_p7 = pnand %p2273_p6, %p2270_p5 }
0x201c   :  { %2278 = shalt.err (!%p2275_p7)
}
0x201d   :  { %s2288_s21 = smov 256   ;;  %s2289_s22 = smov 16  }
0x201e   :  { %1965 = dma.vmem_to_hbm [thread:$0]  %s1960_s7, 512, %s2883_s10, [#allocation3], %s2288_s21, %s2288_s21, %s2289_s22  }
0x201f   :  { %2279 = dma.done.wait [#allocation3], 512  }
0x2020   :  { %2280 = vsyncadd [#allocation3], 4294966784 }
0x2021   :  { %1969 = vsyncpa [#allocation3], 1 }

</bundles_post_ra>
